<compile_context>
chip_gen: v7x
topology: tpu7x:2x2x1
jax: 0.10.0
libtpu: 0.0.40
codegen_flags: <defaults>
</compile_context>

<pallas_src>
import jax
import jax.numpy as jnp
from jax.experimental import pallas as pl
from jax.experimental.pallas import tpu as pltpu

PATCH = 16
EMBED = 768
ADAPT = 64
NUM_CLASSES = 1          # head kernel specializes nc == 1
BN_EPS = 1e-5


def _round_up(x, m):
    return (x + m - 1) // m * m


def _pick_tm(M, target=1024):
    """Largest multiple-of-8 tile that divides M; prefers >= 2 grid steps."""
    cap = min(target, M)
    if M <= target and M >= 16:
        cap = M // 2                      # keep >=2 grid steps (v7x: 2 TCs)
    cap -= cap % 8
    t = max(cap, 8)
    while t >= 8:
        if M % t == 0:
            return t
        t -= 8
    return 0                              # caller falls back to padding


# ----------------------------------------------------------------------------
# Pallas kernels
# ----------------------------------------------------------------------------
def embed_adapter_fuse_kernel(p1_ref, p2_ref, wf_ref, b_ref, o_ref):
    # p1_ref/p2_ref: (tm, 768) bf16  patch pixels of image-1 / image-2 tiles
    # wf_ref       : (768, 64) bf16  patch_embed @ (adapter_1x1 * bn_scale)
    # b_ref        : (1, 64)   f32   folded BN bias
    # o_ref        : (tm, 128) bf16  == cat([relu(f1), relu(f2)], channel)
    # TODO(synk): Lora_Radio_model (RADIO ViT + LoRA) is external; the linear
    # patch embedding (folded into wf) is a deterministic stand-in.
    wf = wf_ref[...]
    b = b_ref[...]
    y1 = jnp.maximum(
        jnp.dot(p1_ref[...], wf, preferred_element_type=jnp.float32) + b, 0.0)
    y2 = jnp.maximum(
        jnp.dot(p2_ref[...], wf, preferred_element_type=jnp.float32) + b, 0.0)
    o_ref[:, :ADAPT] = y1.astype(o_ref.dtype)
    o_ref[:, ADAPT:2 * ADAPT] = y2.astype(o_ref.dtype)


def change_head_kernel(x_ref, w3_ref, b3_ref, w1_ref, rh_ref, rwT_ref,
                       b1_ref, o_ref):
    # Fused change_head + bilinear upsample (align_corners=True), per batch:
    # x_ref  : (1, Hp+2, Wp+2, 128) bf16  padded fuse map (halo in VMEM)
    # w3_ref : (9, 128, 64) bf16  3x3 conv taps, BN scale folded
    # b3_ref : (1, 64) f32        folded BN bias
    # w1_ref : (1, 1, 64) f32     final 1x1 conv weight (nc == 1)
    # rh_ref : (H, Hp) f32        row interp matrix
    # rwT_ref: (Wp, W) f32        col interp matrix (transposed)
    # b1_ref : (1,) f32 in SMEM   final conv bias (commutes with upsample)
    # o_ref  : (1, H, W) f32
    Hp = x_ref.shape[1] - 2
    Wp = x_ref.shape[2] - 2
    cin = x_ref.shape[3]
    cout = w3_ref.shape[-1]

    x = x_ref[0]                                          # (Hp+2, Wp+2, 128)
    acc = jnp.zeros((Hp * Wp, cout), jnp.float32)
    t = 0
    for dy in range(3):
        for dx in range(3):
            tap = x[dy:dy + Hp, dx:dx + Wp, :].reshape(Hp * Wp, cin)
            acc = acc + jnp.dot(tap, w3_ref[t],
                                preferred_element_type=jnp.float32)
            t += 1
    h = jnp.maximum(acc + b3_ref[...], 0.0)               # (Hp*Wp, 64) f32
    h3 = h.reshape(Hp, Wp, cout)                          # split leading dim
    y = jnp.sum(h3 * w1_ref[0], axis=-1)                  # (Hp, Wp) 1x1 conv
    tmp = jnp.dot(rh_ref[...], y, preferred_element_type=jnp.float32)    # (H, Wp)
    out = jnp.dot(tmp, rwT_ref[...], preferred_element_type=jnp.float32)  # (H, W)
    o_ref[0] = (out + b1_ref[0]).astype(o_ref.dtype)


# ----------------------------------------------------------------------------
# pallas_call wrappers
# ----------------------------------------------------------------------------
def embed_adapter_fuse_pallas(p1, p2, wf_bf16, bias_f32):
    M, K = p1.shape
    tm = _pick_tm(M)
    M_pad = M
    if tm == 0:                                   # ragged M: rare pad path
        M_pad = _round_up(M, 8)
        p1 = jnp.pad(p1, ((0, M_pad - M), (0, 0)))
        p2 = jnp.pad(p2, ((0, M_pad - M), (0, 0)))
        tm = _pick_tm(M_pad)
    out = pl.pallas_call(
        embed_adapter_fuse_kernel,
        out_shape=jax.ShapeDtypeStruct((M_pad, 2 * ADAPT), jnp.bfloat16),
        grid=(M_pad // tm,),
        in_specs=[
            pl.BlockSpec((tm, K), lambda i: (i, 0)),
            pl.BlockSpec((tm, K), lambda i: (i, 0)),
            pl.BlockSpec((K, ADAPT), lambda i: (0, 0)),
            pl.BlockSpec((1, ADAPT), lambda i: (0, 0)),
        ],
        out_specs=pl.BlockSpec((tm, 2 * ADAPT), lambda i: (i, 0)),
        compiler_params=pltpu.CompilerParams(dimension_semantics=("parallel",)),
    )(p1, p2, wf_bf16, bias_f32)
    return out if M_pad == M else out[:M]


def change_head_upsample_pallas(fuse_pad, w3_bf16, b3_f32, w1_f32, rh, rwT, b1):
    B, Hpp, Wpp, C2 = fuse_pad.shape
    Hp, Wp = Hpp - 2, Wpp - 2
    H, W = rh.shape[0], rwT.shape[1]
    return pl.pallas_call(
        change_head_kernel,
        out_shape=jax.ShapeDtypeStruct((B, H, W), jnp.float32),
        grid=(B,),
        in_specs=[
            pl.BlockSpec((1, Hpp, Wpp, C2), lambda b: (b, 0, 0, 0)),
            pl.BlockSpec((9, C2, ADAPT), lambda b: (0, 0, 0)),
            pl.BlockSpec((1, ADAPT), lambda b: (0, 0)),
            pl.BlockSpec((1, 1, ADAPT), lambda b: (0, 0, 0)),
            pl.BlockSpec((H, Hp), lambda b: (0, 0)),
            pl.BlockSpec((Wp, W), lambda b: (0, 0)),
            pl.BlockSpec(memory_space=pltpu.MemorySpace.SMEM),
        ],
        out_specs=pl.BlockSpec((1, H, W), lambda b: (b, 0, 0)),
        compiler_params=pltpu.CompilerParams(dimension_semantics=("parallel",)),
    )(fuse_pad, w3_bf16, b3_f32, w1_f32, rh, rwT, b1)


# ----------------------------------------------------------------------------
# Model glue (plain JAX)
# ----------------------------------------------------------------------------
def fold_bn(gamma, beta, mean, var, eps=BN_EPS):
    scale = gamma / jnp.sqrt(var + eps)
    bias = beta - mean * scale
    return scale, bias


def interp_matrix(out_size, in_size):
    # bilinear, align_corners=True:  src = y * (in-1)/(out-1)
    y = jnp.arange(out_size, dtype=jnp.float32)
    if out_size == 1:
        src = jnp.zeros_like(y)
    else:
        src = y * (in_size - 1) / (out_size - 1)
    i0 = jnp.clip(jnp.floor(src).astype(jnp.int32), 0, in_size - 1)
    i1 = jnp.clip(i0 + 1, 0, in_size - 1)
    frac = src - i0.astype(jnp.float32)
    m = (jax.nn.one_hot(i0, in_size, dtype=jnp.float32) * (1.0 - frac)[:, None]
         + jax.nn.one_hot(i1, in_size, dtype=jnp.float32) * frac[:, None])
    return m


def init_params():
    key = jax.random.PRNGKey(0)
    k1, k2, k3, k4 = jax.random.split(key, 4)
    return {
        # TODO(synk): stand-in for Lora_Radio_model — deterministic patch-embed.
        "w_pe": jax.random.normal(k1, (3 * PATCH * PATCH, EMBED), jnp.float32)
                * (2.0 / (3 * PATCH * PATCH)) ** 0.5,
        # adapter: Conv2d(768, 64, 1, bias=False) + BN(64) + ReLU
        "w_ad": jax.random.normal(k2, (EMBED, ADAPT), jnp.float32)
                * (2.0 / EMBED) ** 0.5,
        "ad_gamma": jnp.ones((ADAPT,), jnp.float32),
        "ad_beta": jnp.zeros((ADAPT,), jnp.float32),
        "ad_mean": jnp.zeros((ADAPT,), jnp.float32),
        "ad_var": jnp.ones((ADAPT,), jnp.float32),
        # change_head: Conv2d(128,64,3,pad=1,bias=False)+BN+ReLU+Conv2d(64,nc,1)
        "w3": jax.random.normal(k3, (3, 3, 2 * ADAPT, ADAPT), jnp.float32)
              * (2.0 / (2 * ADAPT * 9)) ** 0.5,
        "ch_gamma": jnp.ones((ADAPT,), jnp.float32),
        "ch_beta": jnp.zeros((ADAPT,), jnp.float32),
        "ch_mean": jnp.zeros((ADAPT,), jnp.float32),
        "ch_var": jnp.ones((ADAPT,), jnp.float32),
        "w1": jax.random.normal(k4, (ADAPT, NUM_CLASSES), jnp.float32)
              * (2.0 / ADAPT) ** 0.5,
        "b1": jnp.zeros((NUM_CLASSES,), jnp.float32),
    }


def prepare_params(params):
    """One-time BN fold + linear-stack fold + bf16 casts (off the hot path)."""
    ad_scale, ad_bias = fold_bn(params["ad_gamma"], params["ad_beta"],
                                params["ad_mean"], params["ad_var"])
    # RADIO stand-in patch-embed and adapter 1x1 conv are both linear with no
    # nonlinearity in between -> fold into one (768, 64) weight.
    # TODO(synk): re-split if a real (non-linear) RADIO backbone is plugged in.
    w_fold = params["w_pe"] @ (params["w_ad"] * ad_scale[None, :])
    ch_scale, ch_bias = fold_bn(params["ch_gamma"], params["ch_beta"],
                                params["ch_mean"], params["ch_var"])
    w3 = (params["w3"] * ch_scale[None, None, None, :]) \
        .reshape(9, 2 * ADAPT, ADAPT)
    return {
        "w_fold": w_fold.astype(jnp.bfloat16),
        "ad_bias": ad_bias.reshape(1, ADAPT).astype(jnp.float32),
        "w3": w3.astype(jnp.bfloat16),
        "ch_bias": ch_bias.reshape(1, ADAPT).astype(jnp.float32),
        "w1": params["w1"][:, 0].reshape(1, 1, ADAPT).astype(jnp.float32),
        "b1": params["b1"].reshape(1).astype(jnp.float32),
    }


def _patchify(x):
    # NCHW -> (B*Hp*Wp, 3*16*16), row-major over (B, Hp, Wp)
    B, C, H, W = x.shape
    Hp, Wp = H // PATCH, W // PATCH
    return (x.reshape(B, C, Hp, PATCH, Wp, PATCH)
              .transpose(0, 2, 4, 1, 3, 5)
              .reshape(B * Hp * Wp, C * PATCH * PATCH))


@jax.jit
def radio_mamba_cd_forward(x1, x2, prep):
    B, _, H, W = x1.shape
    Hp, Wp = H // PATCH, W // PATCH

    p1 = _patchify(x1).astype(jnp.bfloat16)       # (B*Hp*Wp, 768)
    p2 = _patchify(x2).astype(jnp.bfloat16)

    # Fused patch-embed + adapter(+BN+ReLU) for both images; emits the
    # channel-concatenated 'fuse' layout directly (STM stub is identity).
    # TODO(synk): STM (Mamba spatio-temporal block) source not provided.
    fuse = embed_adapter_fuse_pallas(p1, p2, prep["w_fold"], prep["ad_bias"])
    fuse = fuse.reshape(B, Hp, Wp, 2 * ADAPT)     # (B, Hp, Wp, 128)

    # 1-pixel spatial halo for the 3x3 conv (small copy; the 9x im2col slab
    # from the previous version is gone).
    fuse_pad = jnp.pad(fuse, ((0, 0), (1, 1), (1, 1), (0, 0)))

    rh = interp_matrix(H, Hp)                     # (H, Hp)
    rwT = interp_matrix(W, Wp).T                  # (Wp, W)

    out = change_head_upsample_pallas(fuse_pad, prep["w3"], prep["ch_bias"],
                                      prep["w1"], rh, rwT, prep["b1"])
    return out[:, None, :, :]                     # (B, nc=1, H, W)


if __name__ == "__main__":
    B, C, H, W = 2, 3, 64, 64
    key = jax.random.PRNGKey(0)
    kx1, kx2 = jax.random.split(key)
    x1 = jax.random.normal(kx1, (B, C, H, W), jnp.float32)
    x2 = jax.random.normal(kx2, (B, C, H, W), jnp.float32)

    params = init_params()
    prep = prepare_params(params)          # one-time weight fold / bf16 cast

    out = radio_mamba_cd_forward(x1, x2, prep)
    out = jax.block_until_ready(out)

    assert out.shape == (B, NUM_CLASSES, H, W), out.shape
    assert bool(jnp.all(jnp.isfinite(out)))
    print("KERNEL_OK")
</pallas_src>

<mosaic_0001>
module attributes {stable_mosaic.version = 11 : i64} {
  func.func @embed_adapter_fuse_kernel(%arg0: i32, %arg1: memref<16x768xbf16, #tpu.memory_space<vmem>>, %arg2: memref<16x768xbf16, #tpu.memory_space<vmem>>, %arg3: memref<768x64xbf16, #tpu.memory_space<vmem>>, %arg4: memref<1x64xf32, #tpu.memory_space<vmem>>, %arg5: memref<16x128xbf16, #tpu.memory_space<vmem>>) attributes {dimension_semantics = [#tpu.dimension_semantics<parallel>], iteration_bounds = array<i64: 2>, scalar_prefetch = 0 : i64, scratch_operands = 0 : i64, tpu.core_type = #tpu.core_type<tc>, window_params = [{transform_indices = @transform_0, window_bounds = array<i64: 16, 768>}, {transform_indices = @transform_1, window_bounds = array<i64: 16, 768>}, {pipeline_mode = #tpu.pipeline_mode<synchronous>, transform_indices = @transform_2, window_bounds = array<i64: 768, 64>}, {pipeline_mode = #tpu.pipeline_mode<synchronous>, transform_indices = @transform_3, window_bounds = array<i64: 1, 64>}, {transform_indices = @transform_4, window_bounds = array<i64: 16, 128>}]} {
    %c0 = arith.constant 0 : index
    %c0_0 = arith.constant 0 : index
    %0 = vector.load %arg3[%c0, %c0_0] : memref<768x64xbf16, #tpu.memory_space<vmem>>, vector<768x64xbf16>
    %c0_1 = arith.constant 0 : index
    %c0_2 = arith.constant 0 : index
    %1 = vector.load %arg4[%c0_1, %c0_2] : memref<1x64xf32, #tpu.memory_space<vmem>>, vector<1x64xf32>
    %c0_3 = arith.constant 0 : index
    %c0_4 = arith.constant 0 : index
    %2 = vector.load %arg1[%c0_3, %c0_4] : memref<16x768xbf16, #tpu.memory_space<vmem>>, vector<16x768xbf16>
    %cst = arith.constant dense<0.000000e+00> : vector<16x64xf32>
    %3 = tpu.matmul %2, %0, %cst {dimension_numbers = #tpu.dot_dimension_numbers<[1], [0], [0], [1], [0, 0, 1, 1], [], []>} : vector<16x768xbf16>, vector<768x64xbf16>, vector<16x64xf32> -> vector<16x64xf32>
    %4 = vector.broadcast %1 : vector<1x64xf32> to vector<16x64xf32>
    %5 = arith.addf %3, %4 : vector<16x64xf32>
    %cst_5 = arith.constant 0.000000e+00 : f32
    %6 = vector.broadcast %cst_5 : f32 to vector<16x64xf32>
    %7 = arith.maximumf %5, %6 : vector<16x64xf32>
    %c0_6 = arith.constant 0 : index
    %c0_7 = arith.constant 0 : index
    %8 = vector.load %arg2[%c0_6, %c0_7] : memref<16x768xbf16, #tpu.memory_space<vmem>>, vector<16x768xbf16>
    %cst_8 = arith.constant dense<0.000000e+00> : vector<16x64xf32>
    %9 = tpu.matmul %8, %0, %cst_8 {dimension_numbers = #tpu.dot_dimension_numbers<[1], [0], [0], [1], [0, 0, 1, 1], [], []>} : vector<16x768xbf16>, vector<768x64xbf16>, vector<16x64xf32> -> vector<16x64xf32>
    %10 = vector.broadcast %1 : vector<1x64xf32> to vector<16x64xf32>
    %11 = arith.addf %9, %10 : vector<16x64xf32>
    %cst_9 = arith.constant 0.000000e+00 : f32
    %12 = vector.broadcast %cst_9 : f32 to vector<16x64xf32>
    %13 = arith.maximumf %11, %12 : vector<16x64xf32>
    %14 = arith.truncf %7 : vector<16x64xf32> to vector<16x64xbf16>
    %c0_10 = arith.constant 0 : index
    %c0_11 = arith.constant 0 : index
    %15 = vector.load %arg5[%c0_10, %c0_11] : memref<16x128xbf16, #tpu.memory_space<vmem>>, vector<16x64xbf16>
    tpu.vector_store %arg5[%c0_10, %c0_11], %14 {strides = array<i32>} : memref<16x128xbf16, #tpu.memory_space<vmem>>, vector<16x64xbf16>,
    %16 = arith.truncf %13 : vector<16x64xf32> to vector<16x64xbf16>
    %c0_12 = arith.constant 0 : index
    %c64 = arith.constant 64 : index
    %17 = vector.load %arg5[%c0_12, %c64] : memref<16x128xbf16, #tpu.memory_space<vmem>>, vector<16x64xbf16>
    tpu.vector_store %arg5[%c0_12, %c64], %16 {strides = array<i32>} : memref<16x128xbf16, #tpu.memory_space<vmem>>, vector<16x64xbf16>,
    return
  }
  func.func @transform_0(%arg0: i32) -> (i32, i32) {
    %c0_i32 = arith.constant 0 : i32
    %c0_i32_0 = arith.constant 0 : i32
    return %arg0, %c0_i32 : i32, i32
  }
  func.func @transform_1(%arg0: i32) -> (i32, i32) {
    %c0_i32 = arith.constant 0 : i32
    %c0_i32_0 = arith.constant 0 : i32
    return %arg0, %c0_i32 : i32, i32
  }
  func.func @transform_2(%arg0: i32) -> (i32, i32) {
    %c0_i32 = arith.constant 0 : i32
    %c0_i32_0 = arith.constant 0 : i32
    %c0_i32_1 = arith.constant 0 : i32
    return %c0_i32, %c0_i32_0 : i32, i32
  }
  func.func @transform_3(%arg0: i32) -> (i32, i32) {
    %c0_i32 = arith.constant 0 : i32
    %c0_i32_0 = arith.constant 0 : i32
    %c0_i32_1 = arith.constant 0 : i32
    return %c0_i32, %c0_i32_0 : i32, i32
  }
  func.func @transform_4(%arg0: i32) -> (i32, i32) {
    %c0_i32 = arith.constant 0 : i32
    %c0_i32_0 = arith.constant 0 : i32
    return %arg0, %c0_i32 : i32, i32
  }
}

module attributes {stable_mosaic.version = 11 : i64} {
  func.func @change_head_kernel(%arg0: i32, %arg1: memref<1x6x6x128xbf16, #tpu.memory_space<vmem>>, %arg2: memref<9x128x64xbf16, #tpu.memory_space<vmem>>, %arg3: memref<1x64xf32, #tpu.memory_space<vmem>>, %arg4: memref<1x1x64xf32, #tpu.memory_space<vmem>>, %arg5: memref<64x4xf32, #tpu.memory_space<vmem>>, %arg6: memref<4x64xf32, #tpu.memory_space<vmem>>, %arg7: memref<1xf32, #tpu.memory_space<smem>>, %arg8: memref<1x64x64xf32, #tpu.memory_space<vmem>>) attributes {dimension_semantics = [#tpu.dimension_semantics<parallel>], iteration_bounds = array<i64: 2>, scalar_prefetch = 0 : i64, scratch_operands = 0 : i64, tpu.core_type = #tpu.core_type<tc>, window_params = [{transform_indices = @transform_0, window_bounds = array<i64: 1, 6, 6, 128>}, {pipeline_mode = #tpu.pipeline_mode<synchronous>, transform_indices = @transform_1, window_bounds = array<i64: 9, 128, 64>}, {pipeline_mode = #tpu.pipeline_mode<synchronous>, transform_indices = @transform_2, window_bounds = array<i64: 1, 64>}, {pipeline_mode = #tpu.pipeline_mode<synchronous>, transform_indices = @transform_3, window_bounds = array<i64: 1, 1, 64>}, {pipeline_mode = #tpu.pipeline_mode<synchronous>, transform_indices = @transform_4, window_bounds = array<i64: 64, 4>}, {pipeline_mode = #tpu.pipeline_mode<synchronous>, transform_indices = @transform_5, window_bounds = array<i64: 4, 64>}, {transform_indices = @transform_6, window_bounds = array<i64: 1>}, {transform_indices = @transform_7, window_bounds = array<i64: 1, 64, 64>}]} {
    %c0 = arith.constant 0 : index
    %c0_0 = arith.constant 0 : index
    %c0_1 = arith.constant 0 : index
    %c0_2 = arith.constant 0 : index
    %0 = vector.load %arg1[%c0, %c0_0, %c0_1, %c0_2] : memref<1x6x6x128xbf16, #tpu.memory_space<vmem>>, vector<1x6x6x128xbf16>
    %1 = vector.shape_cast %0 : vector<1x6x6x128xbf16> to vector<6x6x128xbf16>
    %cst = arith.constant 0.000000e+00 : f32
    %2 = vector.broadcast %cst : f32 to vector<16x64xf32>
    %3 = vector.extract_strided_slice %1 {offsets = [0, 0, 0], sizes = [4, 4, 128], strides = [1, 1, 1]} : vector<6x6x128xbf16> to vector<4x4x128xbf16>
    %4 = vector.shape_cast %3 : vector<4x4x128xbf16> to vector<16x128xbf16>
    %c0_3 = arith.constant 0 : index
    %c0_4 = arith.constant 0 : index
    %c0_5 = arith.constant 0 : index
    %5 = vector.load %arg2[%c0_3, %c0_4, %c0_5] : memref<9x128x64xbf16, #tpu.memory_space<vmem>>, vector<1x128x64xbf16>
    %6 = vector.shape_cast %5 : vector<1x128x64xbf16> to vector<128x64xbf16>
    %cst_6 = arith.constant dense<0.000000e+00> : vector<16x64xf32>
    %7 = tpu.matmul %4, %6, %cst_6 {dimension_numbers = #tpu.dot_dimension_numbers<[1], [0], [0], [1], [0, 0, 1, 1], [], []>} : vector<16x128xbf16>, vector<128x64xbf16>, vector<16x64xf32> -> vector<16x64xf32>
    %8 = arith.addf %2, %7 : vector<16x64xf32>
    %9 = vector.extract_strided_slice %1 {offsets = [0, 1, 0], sizes = [4, 4, 128], strides = [1, 1, 1]} : vector<6x6x128xbf16> to vector<4x4x128xbf16>
    %10 = vector.shape_cast %9 : vector<4x4x128xbf16> to vector<16x128xbf16>
    %c1 = arith.constant 1 : index
    %c0_7 = arith.constant 0 : index
    %c0_8 = arith.constant 0 : index
    %11 = vector.load %arg2[%c1, %c0_7, %c0_8] : memref<9x128x64xbf16, #tpu.memory_space<vmem>>, vector<1x128x64xbf16>
    %12 = vector.shape_cast %11 : vector<1x128x64xbf16> to vector<128x64xbf16>
    %cst_9 = arith.constant dense<0.000000e+00> : vector<16x64xf32>
    %13 = tpu.matmul %10, %12, %cst_9 {dimension_numbers = #tpu.dot_dimension_numbers<[1], [0], [0], [1], [0, 0, 1, 1], [], []>} : vector<16x128xbf16>, vector<128x64xbf16>, vector<16x64xf32> -> vector<16x64xf32>
    %14 = arith.addf %8, %13 : vector<16x64xf32>
    %15 = vector.extract_strided_slice %1 {offsets = [0, 2, 0], sizes = [4, 4, 128], strides = [1, 1, 1]} : vector<6x6x128xbf16> to vector<4x4x128xbf16>
    %16 = vector.shape_cast %15 : vector<4x4x128xbf16> to vector<16x128xbf16>
    %c2 = arith.constant 2 : index
    %c0_10 = arith.constant 0 : index
    %c0_11 = arith.constant 0 : index
    %17 = vector.load %arg2[%c2, %c0_10, %c0_11] : memref<9x128x64xbf16, #tpu.memory_space<vmem>>, vector<1x128x64xbf16>
    %18 = vector.shape_cast %17 : vector<1x128x64xbf16> to vector<128x64xbf16>
    %cst_12 = arith.constant dense<0.000000e+00> : vector<16x64xf32>
    %19 = tpu.matmul %16, %18, %cst_12 {dimension_numbers = #tpu.dot_dimension_numbers<[1], [0], [0], [1], [0, 0, 1, 1], [], []>} : vector<16x128xbf16>, vector<128x64xbf16>, vector<16x64xf32> -> vector<16x64xf32>
    %20 = arith.addf %14, %19 : vector<16x64xf32>
    %21 = vector.extract_strided_slice %1 {offsets = [1, 0, 0], sizes = [4, 4, 128], strides = [1, 1, 1]} : vector<6x6x128xbf16> to vector<4x4x128xbf16>
    %22 = vector.shape_cast %21 : vector<4x4x128xbf16> to vector<16x128xbf16>
    %c3 = arith.constant 3 : index
    %c0_13 = arith.constant 0 : index
    %c0_14 = arith.constant 0 : index
    %23 = vector.load %arg2[%c3, %c0_13, %c0_14] : memref<9x128x64xbf16, #tpu.memory_space<vmem>>, vector<1x128x64xbf16>
    %24 = vector.shape_cast %23 : vector<1x128x64xbf16> to vector<128x64xbf16>
    %cst_15 = arith.constant dense<0.000000e+00> : vector<16x64xf32>
    %25 = tpu.matmul %22, %24, %cst_15 {dimension_numbers = #tpu.dot_dimension_numbers<[1], [0], [0], [1], [0, 0, 1, 1], [], []>} : vector<16x128xbf16>, vector<128x64xbf16>, vector<16x64xf32> -> vector<16x64xf32>
    %26 = arith.addf %20, %25 : vector<16x64xf32>
    %27 = vector.extract_strided_slice %1 {offsets = [1, 1, 0], sizes = [4, 4, 128], strides = [1, 1, 1]} : vector<6x6x128xbf16> to vector<4x4x128xbf16>
    %28 = vector.shape_cast %27 : vector<4x4x128xbf16> to vector<16x128xbf16>
    %c4 = arith.constant 4 : index
    %c0_16 = arith.constant 0 : index
    %c0_17 = arith.constant 0 : index
    %29 = vector.load %arg2[%c4, %c0_16, %c0_17] : memref<9x128x64xbf16, #tpu.memory_space<vmem>>, vector<1x128x64xbf16>
    %30 = vector.shape_cast %29 : vector<1x128x64xbf16> to vector<128x64xbf16>
    %cst_18 = arith.constant dense<0.000000e+00> : vector<16x64xf32>
    %31 = tpu.matmul %28, %30, %cst_18 {dimension_numbers = #tpu.dot_dimension_numbers<[1], [0], [0], [1], [0, 0, 1, 1], [], []>} : vector<16x128xbf16>, vector<128x64xbf16>, vector<16x64xf32> -> vector<16x64xf32>
    %32 = arith.addf %26, %31 : vector<16x64xf32>
    %33 = vector.extract_strided_slice %1 {offsets = [1, 2, 0], sizes = [4, 4, 128], strides = [1, 1, 1]} : vector<6x6x128xbf16> to vector<4x4x128xbf16>
    %34 = vector.shape_cast %33 : vector<4x4x128xbf16> to vector<16x128xbf16>
    %c5 = arith.constant 5 : index
    %c0_19 = arith.constant 0 : index
    %c0_20 = arith.constant 0 : index
    %35 = vector.load %arg2[%c5, %c0_19, %c0_20] : memref<9x128x64xbf16, #tpu.memory_space<vmem>>, vector<1x128x64xbf16>
    %36 = vector.shape_cast %35 : vector<1x128x64xbf16> to vector<128x64xbf16>
    %cst_21 = arith.constant dense<0.000000e+00> : vector<16x64xf32>
    %37 = tpu.matmul %34, %36, %cst_21 {dimension_numbers = #tpu.dot_dimension_numbers<[1], [0], [0], [1], [0, 0, 1, 1], [], []>} : vector<16x128xbf16>, vector<128x64xbf16>, vector<16x64xf32> -> vector<16x64xf32>
    %38 = arith.addf %32, %37 : vector<16x64xf32>
    %39 = vector.extract_strided_slice %1 {offsets = [2, 0, 0], sizes = [4, 4, 128], strides = [1, 1, 1]} : vector<6x6x128xbf16> to vector<4x4x128xbf16>
    %40 = vector.shape_cast %39 : vector<4x4x128xbf16> to vector<16x128xbf16>
    %c6 = arith.constant 6 : index
    %c0_22 = arith.constant 0 : index
    %c0_23 = arith.constant 0 : index
    %41 = vector.load %arg2[%c6, %c0_22, %c0_23] : memref<9x128x64xbf16, #tpu.memory_space<vmem>>, vector<1x128x64xbf16>
    %42 = vector.shape_cast %41 : vector<1x128x64xbf16> to vector<128x64xbf16>
    %cst_24 = arith.constant dense<0.000000e+00> : vector<16x64xf32>
    %43 = tpu.matmul %40, %42, %cst_24 {dimension_numbers = #tpu.dot_dimension_numbers<[1], [0], [0], [1], [0, 0, 1, 1], [], []>} : vector<16x128xbf16>, vector<128x64xbf16>, vector<16x64xf32> -> vector<16x64xf32>
    %44 = arith.addf %38, %43 : vector<16x64xf32>
    %45 = vector.extract_strided_slice %1 {offsets = [2, 1, 0], sizes = [4, 4, 128], strides = [1, 1, 1]} : vector<6x6x128xbf16> to vector<4x4x128xbf16>
    %46 = vector.shape_cast %45 : vector<4x4x128xbf16> to vector<16x128xbf16>
    %c7 = arith.constant 7 : index
    %c0_25 = arith.constant 0 : index
    %c0_26 = arith.constant 0 : index
    %47 = vector.load %arg2[%c7, %c0_25, %c0_26] : memref<9x128x64xbf16, #tpu.memory_space<vmem>>, vector<1x128x64xbf16>
    %48 = vector.shape_cast %47 : vector<1x128x64xbf16> to vector<128x64xbf16>
    %cst_27 = arith.constant dense<0.000000e+00> : vector<16x64xf32>
    %49 = tpu.matmul %46, %48, %cst_27 {dimension_numbers = #tpu.dot_dimension_numbers<[1], [0], [0], [1], [0, 0, 1, 1], [], []>} : vector<16x128xbf16>, vector<128x64xbf16>, vector<16x64xf32> -> vector<16x64xf32>
    %50 = arith.addf %44, %49 : vector<16x64xf32>
    %51 = vector.extract_strided_slice %1 {offsets = [2, 2, 0], sizes = [4, 4, 128], strides = [1, 1, 1]} : vector<6x6x128xbf16> to vector<4x4x128xbf16>
    %52 = vector.shape_cast %51 : vector<4x4x128xbf16> to vector<16x128xbf16>
    %c8 = arith.constant 8 : index
    %c0_28 = arith.constant 0 : index
    %c0_29 = arith.constant 0 : index
    %53 = vector.load %arg2[%c8, %c0_28, %c0_29] : memref<9x128x64xbf16, #tpu.memory_space<vmem>>, vector<1x128x64xbf16>
    %54 = vector.shape_cast %53 : vector<1x128x64xbf16> to vector<128x64xbf16>
    %cst_30 = arith.constant dense<0.000000e+00> : vector<16x64xf32>
    %55 = tpu.matmul %52, %54, %cst_30 {dimension_numbers = #tpu.dot_dimension_numbers<[1], [0], [0], [1], [0, 0, 1, 1], [], []>} : vector<16x128xbf16>, vector<128x64xbf16>, vector<16x64xf32> -> vector<16x64xf32>
    %56 = arith.addf %50, %55 : vector<16x64xf32>
    %c0_31 = arith.constant 0 : index
    %c0_32 = arith.constant 0 : index
    %57 = vector.load %arg3[%c0_31, %c0_32] : memref<1x64xf32, #tpu.memory_space<vmem>>, vector<1x64xf32>
    %58 = vector.broadcast %57 : vector<1x64xf32> to vector<16x64xf32>
    %59 = arith.addf %56, %58 : vector<16x64xf32>
    %cst_33 = arith.constant 0.000000e+00 : f32
    %60 = vector.broadcast %cst_33 : f32 to vector<16x64xf32>
    %61 = arith.maximumf %59, %60 : vector<16x64xf32>
    %62 = vector.shape_cast %61 : vector<16x64xf32> to vector<4x4x64xf32>
    %c0_34 = arith.constant 0 : index
    %c0_35 = arith.constant 0 : index
    %c0_36 = arith.constant 0 : index
    %63 = vector.load %arg4[%c0_34, %c0_35, %c0_36] : memref<1x1x64xf32, #tpu.memory_space<vmem>>, vector<1x1x64xf32>
    %64 = vector.shape_cast %63 : vector<1x1x64xf32> to vector<1x64xf32>
    %65 = vector.shape_cast %64 : vector<1x64xf32> to vector<1x1x64xf32>
    %66 = vector.broadcast %65 : vector<1x1x64xf32> to vector<4x4x64xf32>
    %67 = arith.mulf %62, %66 : vector<4x4x64xf32>
    %cst_37 = arith.constant dense<0.000000e+00> : vector<4x4xf32>
    %68 = vector.multi_reduction <add>, %67, %cst_37 [2] : vector<4x4x64xf32> to vector<4x4xf32>
    %c0_38 = arith.constant 0 : index
    %c0_39 = arith.constant 0 : index
    %69 = vector.load %arg5[%c0_38, %c0_39] : memref<64x4xf32, #tpu.memory_space<vmem>>, vector<64x4xf32>
    %cst_40 = arith.constant dense<0.000000e+00> : vector<64x4xf32>
    %70 = tpu.matmul %69, %68, %cst_40 {dimension_numbers = #tpu.dot_dimension_numbers<[1], [0], [0], [1], [0, 0, 1, 1], [], []>} : vector<64x4xf32>, vector<4x4xf32>, vector<64x4xf32> -> vector<64x4xf32>
    %c0_41 = arith.constant 0 : index
    %c0_42 = arith.constant 0 : index
    %71 = vector.load %arg6[%c0_41, %c0_42] : memref<4x64xf32, #tpu.memory_space<vmem>>, vector<4x64xf32>
    %cst_43 = arith.constant dense<0.000000e+00> : vector<64x64xf32>
    %72 = tpu.matmul %70, %71, %cst_43 {dimension_numbers = #tpu.dot_dimension_numbers<[1], [0], [0], [1], [0, 0, 1, 1], [], []>} : vector<64x4xf32>, vector<4x64xf32>, vector<64x64xf32> -> vector<64x64xf32>
    %c0_44 = arith.constant 0 : index
    %73 = memref.load %arg7[%c0_44] : memref<1xf32, #tpu.memory_space<smem>>
    %74 = vector.broadcast %73 : f32 to vector<64x64xf32>
    %75 = arith.addf %72, %74 : vector<64x64xf32>
    %c0_45 = arith.constant 0 : index
    %c0_46 = arith.constant 0 : index
    %c0_47 = arith.constant 0 : index
    %76 = vector.load %arg8[%c0_45, %c0_46, %c0_47] : memref<1x64x64xf32, #tpu.memory_space<vmem>>, vector<1x64x64xf32>
    %77 = vector.shape_cast %76 : vector<1x64x64xf32> to vector<64x64xf32>
    %78 = vector.shape_cast %75 : vector<64x64xf32> to vector<1x64x64xf32>
    tpu.vector_store %arg8[%c0_45, %c0_46, %c0_47], %78 {strides = array<i32>} : memref<1x64x64xf32, #tpu.memory_space<vmem>>, vector<1x64x64xf32>,
    return
  }
  func.func @transform_0(%arg0: i32) -> (i32, i32, i32, i32) {
    %c0_i32 = arith.constant 0 : i32
    %c0_i32_0 = arith.constant 0 : i32
    %c0_i32_1 = arith.constant 0 : i32
    %c0_i32_2 = arith.constant 0 : i32
    return %arg0, %c0_i32, %c0_i32_0, %c0_i32_1 : i32, i32, i32, i32
  }
  func.func @transform_1(%arg0: i32) -> (i32, i32, i32) {
    %c0_i32 = arith.constant 0 : i32
    %c0_i32_0 = arith.constant 0 : i32
    %c0_i32_1 = arith.constant 0 : i32
    %c0_i32_2 = arith.constant 0 : i32
    return %c0_i32, %c0_i32_0, %c0_i32_1 : i32, i32, i32
  }
  func.func @transform_2(%arg0: i32) -> (i32, i32) {
    %c0_i32 = arith.constant 0 : i32
    %c0_i32_0 = arith.constant 0 : i32
    %c0_i32_1 = arith.constant 0 : i32
    return %c0_i32, %c0_i32_0 : i32, i32
  }
  func.func @transform_3(%arg0: i32) -> (i32, i32, i32) {
    %c0_i32 = arith.constant 0 : i32
    %c0_i32_0 = arith.constant 0 : i32
    %c0_i32_1 = arith.constant 0 : i32
    %c0_i32_2 = arith.constant 0 : i32
    return %c0_i32, %c0_i32_0, %c0_i32_1 : i32, i32, i32
  }
  func.func @transform_4(%arg0: i32) -> (i32, i32) {
    %c0_i32 = arith.constant 0 : i32
    %c0_i32_0 = arith.constant 0 : i32
    %c0_i32_1 = arith.constant 0 : i32
    return %c0_i32, %c0_i32_0 : i32, i32
  }
  func.func @transform_5(%arg0: i32) -> (i32, i32) {
    %c0_i32 = arith.constant 0 : i32
    %c0_i32_0 = arith.constant 0 : i32
    %c0_i32_1 = arith.constant 0 : i32
    return %c0_i32, %c0_i32_0 : i32, i32
  }
  func.func @transform_6(%arg0: i32) -> i32 {
    %c0_i32 = arith.constant 0 : i32
    %c0_i32_0 = arith.constant 0 : i32
    return %c0_i32 : i32
  }
  func.func @transform_7(%arg0: i32) -> (i32, i32, i32) {
    %c0_i32 = arith.constant 0 : i32
    %c0_i32_0 = arith.constant 0 : i32
    %c0_i32_1 = arith.constant 0 : i32
    return %arg0, %c0_i32, %c0_i32_0 : i32, i32, i32
  }
}

</mosaic_0001>

<bundles_post_ra>
// kernel: radio_mamba_cd_forward.2
= control target key start
LH: loop header
LB: loop body
LE: loop exit
PB: predicated region body
PF: predicated region fallthrough
CT: control target
= control target key end

     0   :  { %s1361_s15 = smov 0   ;;  %s1688_s0 = inlined_call_operand.vmem [shape: bf16[32,768], index: 0, kind: input, shape index: {}]   ;;  %s1689_s1 = inlined_call_operand.vmem [shape: bf16[32,768], index: 1, kind: input, shape index: {}]   ;;  %s1690_s2 = inlined_call_operand.vmem [shape: bf16[768,64], index: 2, kind: input, shape index: {}]   ;;  %s1691_s3 = inlined_call_operand.vmem [shape: f32[1,64], index: 3, kind: input, shape index: {}]   ;;  %s1692_s4 = inlined_call_operand.vmem [shape: bf16[32,128], index: 4, kind: output, shape index: {}]  }
   0x1 LB: > { %s1037_s16 = sadd.s32 4294967295, %s1333_s15   ;;  %p1041_p0 = scmp.ge.s32.totalorder %s1333_s15, 1  ;;  %s1333_s15 = sphi %s1361_s15, %s14_s15  }
   0x2   : > { %p176_p1 = scmp.lt.s32.totalorder %s1333_s15, 3 }
   0x4   : > { %p177_p2 = pnand %p1041_p0, %p176_p1 }
   0x5   : > { %v1372_v0 = vld [vmem:[%s1690_s2 + $0x40] sm:$0xff] (!%p177_p2)   ;;  %v1395_v4 = vld [vmem:[%s1690_s2 + $0x48] sm:$0xff] (!%p177_p2)   ;;  %v1419_v8 = vld [vmem:[%s1690_s2 + $0x50] sm:$0xff] (!%p177_p2)   ;;  %s1042_s23 = sshll.u32 (!%p177_p2), %s1037_s16, 1  ;;  %vm951_vm0 = vcmask (!%p177_p2), 519168   ;;  %vm966_vm1 = vcmask (!%p177_p2), 1043968  }
   0x6   : > { %180 = sbr.rel (%p177_p2) target bundleno = 446 (0x1be), region = 36  ;;  %v1377_v1 = vld [vmem:[%s1690_s2 + $0xc0] sm:$0xff] (!%p177_p2)   ;;  %1119 = vmatprep.subr.bf16.mxu0 (!%p177_p2), %v1372_v0  ;;  %v1401_v5 = vld [vmem:[%s1690_s2 + $0xc8] sm:$0xff] (!%p177_p2)   ;;  %v1425_v9 = vld [vmem:[%s1690_s2 + $0xd0] sm:$0xff] (!%p177_p2)   ;;  %p210_p3 = scmp.lt.s32.totalorder (!%p177_p2), %s1042_s23, 3 }
   0x7   : > { %v1383_v2 = vld [vmem:[%s1690_s2] sm:$0xff] (!%p177_p2)   ;;  %1141 = vmatprep.subr.bf16.mxu1 (!%p177_p2), %v1377_v1  ;;  %v1407_v6 = vld [vmem:[%s1690_s2 + $0x8] sm:$0xff] (!%p177_p2)   ;;  %v1431_v10 = vld [vmem:[%s1690_s2 + $0x10] sm:$0xff] (!%p177_p2)  }
   0x8   : > { %v1389_v3 = vld [vmem:[%s1690_s2 + $0x80] sm:$0xff] (!%p177_p2)   ;;  %1120 = vmatpush3.bf16.msra.mxu0 (!%p177_p2), %v1383_v2  ;;  %v1413_v7 = vld [vmem:[%s1690_s2 + $0x88] sm:$0xff] (!%p177_p2)   ;;  %v1437_v11 = vld [vmem:[%s1690_s2 + $0x90] sm:$0xff] (!%p177_p2)  }
   0x9   : > { %1142 = vmatpush3.bf16.msra.mxu1 (!%p177_p2), %v1389_v3  ;;  %1121 = vmatprep.subr.bf16.mxu0 (!%p177_p2), %v1395_v4  ;;  %v1443_v12 = vld [vmem:[%s1690_s2 + $0x58] sm:$0xff] (!%p177_p2)   ;;  %v1469_v16 = vld [vmem:[%s1690_s2 + $0x60] sm:$0xff] (!%p177_p2)   ;;  %v1493_v20 = vld [vmem:[%s1690_s2 + $0x68] sm:$0xff] (!%p177_p2)  }
   0xa   : > { %1143 = vmatprep.subr.bf16.mxu1 (!%p177_p2), %v1401_v5  ;;  %v1449_v13 = vld [vmem:[%s1690_s2 + $0xd8] sm:$0xff] (!%p177_p2)   ;;  %v1475_v17 = vld [vmem:[%s1690_s2 + $0xe0] sm:$0xff] (!%p177_p2)   ;;  %v1499_v21 = vld [vmem:[%s1690_s2 + $0xe8] sm:$0xff] (!%p177_p2)  }
   0xb   : > { %v1455_v14 = vld [vmem:[%s1690_s2 + $0x18] sm:$0xff] (!%p177_p2)   ;;  %v1481_v18 = vld [vmem:[%s1690_s2 + $0x20] sm:$0xff] (!%p177_p2)   ;;  %v1507_v22 = vld [vmem:[%s1690_s2 + $0x28] sm:$0xff] (!%p177_p2)  }
   0xc   : > { %1122 = vmatpush3.bf16.msra.mxu0 (!%p177_p2), %v1407_v6  ;;  %v1463_v15 = vld [vmem:[%s1690_s2 + $0x98] sm:$0xff] (!%p177_p2)   ;;  %v1487_v19 = vld [vmem:[%s1690_s2 + $0xa0] sm:$0xff] (!%p177_p2)   ;;  %v1513_v23 = vld [vmem:[%s1690_s2 + $0xa8] sm:$0xff] (!%p177_p2)  }
   0xd   : > { %1144 = vmatpush3.bf16.msra.mxu1 %v1413_v7  ;;  %1123 = vmatprep.subr.bf16.mxu0 %v1419_v8  ;;  %s1694_s23 = smov (!%p210_p3, %s1042_s23), 3  ;;  %v1519_v24 = vld [vmem:[%s1690_s2 + $0x70] sm:$0xff]   ;;  %v1544_v28 = vld [vmem:[%s1690_s2 + $0x78] sm:$0xff]   ;;  %v1299_v36 = vld [vmem:[%s1690_s2 + $0x140] sm:$0xff]  }
   0xe   : > { %1145 = vmatprep.subr.bf16.mxu1 %v1425_v9  ;;  %v1525_v25 = vld [vmem:[%s1690_s2 + $0xf0] sm:$0xff]   ;;  %s1251_s21 = smul.u32 24, %s1694_s23  ;;  %v1550_v29 = vld [vmem:[%s1690_s2 + $0xf8] sm:$0xff]   ;;  %v1300_v37 = vld [vmem:[%s1690_s2 + $0x100] sm:$0xff]   ;;  %s1047_s28 = sshll.u32 %s1694_s23, 2 }
   0xf   : > { %v1532_v26 = vld [vmem:[%s1690_s2 + $0x30] sm:$0xff]   ;;  %v1563_v30 = vld [vmem:[%s1690_s2 + $0x38] sm:$0xff]   ;;  %v1301_v38 = vld [vmem:[%s1690_s2 + $0x148] sm:$0xff]   ;;  %s1679_s30 = scalar_lea.vmem %s1692_s4, %s1047_s28  ;;  %s1335_s23 = smov 64  }
  0x10   : > { %1124 = vmatpush3.bf16.msra.mxu0 %v1431_v10  ;;  %v1538_v27 = vld [vmem:[%s1690_s2 + $0xb0] sm:$0xff]   ;;  %s1557_s6 = scalar_lea.vmem %s1688_s0, %s1251_s21  ;;  %v1569_v31 = vld [vmem:[%s1690_s2 + $0xb8] sm:$0xff]   ;;  %v1302_v39 = vld [vmem:[%s1690_s2 + $0x108] sm:$0xff]   ;;  %s1620_s11 = scalar_lea.vmem %s1689_s1, %s1251_s21 }
  0x11   : > { %1146 = vmatpush3.bf16.msra.mxu1 %v1437_v11  ;;  %1125 = vmatprep.subr.bf16.mxu0 %v1443_v12  ;;  %v1293_v32 = vld [vmem:[%s1557_s6] ss:$24 sps:$4 sm:$0xff]   ;;  %v1295_v33 = vld [vmem:[%s1557_s6 + $0x4] ss:$24 sps:$4 sm:$0xff]   ;;  %v1303_v40 = vld [vmem:[%s1690_s2 + $0x150] sm:$0xff]  }
  0x12   : > { %1147 = vmatprep.subr.bf16.mxu1 %v1449_v13  ;;  %v1296_v34 = vld [vmem:[%s1557_s6 + $0x8] ss:$24 sps:$4 sm:$0xff]   ;;  %v1298_v35 = vld [vmem:[%s1557_s6 + $0xc] ss:$24 sps:$4 sm:$0xff]   ;;  %689 = vmatprep.mubr.bf16.mxu0 %v1295_v33  ;;  %v1304_v41 = vld [vmem:[%s1690_s2 + $0x110] sm:$0xff]  }
  0x13   : > { %730 = vmatprep.mubr.bf16.mxu1 %v1298_v35  ;;  %v1305_v42 = vld [vmem:[%s1690_s2 + $0x158] sm:$0xff]   ;;  %v1307_v44 = vld [vmem:[%s1690_s2 + $0x160] sm:$0xff]   ;;  %v1309_v46 = vld [vmem:[%s1690_s2 + $0x168] sm:$0xff]  }
  0x14   : > { %1126 = vmatpush3.bf16.msra.mxu0 %v1455_v14  ;;  %v1306_v43 = vld [vmem:[%s1690_s2 + $0x118] sm:$0xff]   ;;  %v1308_v45 = vld [vmem:[%s1690_s2 + $0x120] sm:$0xff]   ;;  %v1317_v47 = vld [vmem:[%s1557_s6 + $0x14] ss:$24 sps:$4 sm:$0xff]  }
  0x15   : > { %1148 = vmatpush3.bf16.msra.mxu1 %v1463_v15  ;;  %1127 = vmatprep.subr.bf16.mxu0 %v1469_v16  ;;  %v1320_v48 = vld [vmem:[%s1620_s11 + $0x4] ss:$24 sps:$4 sm:$0xff]   ;;  %v1310_v49 = vld [vmem:[%s1690_s2 + $0x128] sm:$0xff]   ;;  %v1311_v50 = vld [vmem:[%s1690_s2 + $0x170] sm:$0xff]  }
  0x16   : > { %1149 = vmatprep.subr.bf16.mxu1 %v1475_v17  ;;  %v1312_v51 = vld [vmem:[%s1690_s2 + $0x130] sm:$0xff]   ;;  %v1313_v52 = vld [vmem:[%s1690_s2 + $0x178] sm:$0xff]   ;;  %v1323_v56 = vld [vmem:[%s1620_s11 + $0xc] ss:$24 sps:$4 sm:$0xff]  }
  0x17   : > { %v1314_v53 = vld [vmem:[%s1690_s2 + $0x138] sm:$0xff]   ;;  %v1315_v54 = vld [vmem:[%s1557_s6 + $0x10] ss:$24 sps:$4 sm:$0xff]   ;;  %v1326_v57 = vld [vmem:[%s1620_s11 + $0x14] ss:$24 sps:$4 sm:$0xff]  }
  0x18   : > { %1128 = vmatpush3.bf16.msra.mxu0 %v1481_v18  ;;  %v1318_v55 = vld [vmem:[%s1620_s11] ss:$24 sps:$4 sm:$0xff]   ;;  %v1324_v59 = vld [vmem:[%s1620_s11 + $0x10] ss:$24 sps:$4 sm:$0xff]  }
  0x19   : > { %1150 = vmatpush3.bf16.msra.mxu1 %v1487_v19  ;;  %1129 = vmatprep.subr.bf16.mxu0 %v1493_v20  ;;  %v1321_v58 = vld [vmem:[%s1620_s11 + $0x8] ss:$24 sps:$4 sm:$0xff]  }
  0x1a   : > { %1151 = vmatprep.subr.bf16.mxu1 %v1499_v21  ;;  %v1048_v62 = vld [vmem:[%s1691_s3] ss:$0 sm:$0xff] }
  0x1c   : > { %1130 = vmatpush3.bf16.msra.mxu0 %v1507_v22 }
  0x1d   : > { %1152 = vmatpush3.bf16.msra.mxu1 %v1513_v23  ;;  %1131 = vmatprep.subr.bf16.mxu0 %v1519_v24 }
  0x1e   : > { %1153 = vmatprep.subr.bf16.mxu1 %v1525_v25 }
  0x20   : > { %1132 = vmatpush3.bf16.msra.mxu0 %v1532_v26 }
  0x21   : > { %1154 = vmatpush3.bf16.msra.mxu1 %v1538_v27  ;;  %1133 = vmatprep.subr.bf16.mxu0 %v1544_v28 }
  0x22   : > { %1155 = vmatprep.subr.bf16.mxu1 %v1550_v29 }
  0x24   : > { %1134 = vmatpush3.bf16.msra.mxu0 %v1563_v30 }
  0x25   : > { %1156 = vmatpush3.bf16.msra.mxu1 %v1569_v31  ;;  %1163 = vmatprep.subr.bf16.mxu0 %v1299_v36 }
  0x26   : > { %1185 = vmatprep.subr.bf16.mxu1 %v1372_v0 }
  0x27   : > { %690 = vmatmul.mubr.bf16.vlgmr.msra.gmra.mrb[0].mxu0 %v1293_v32 }
  0x28   : > { %731 = vmatmul.mubr.bf16.vlgmr.msra.gmra.mrb[0].mxu1 %v1296_v34  ;;  %1164 = vmatpush3.bf16.msra.mxu0 %v1300_v37 }
  0x29   : > { %1186 = vmatpush3.bf16.msra.mxu1 %v1383_v2  ;;  %1165 = vmatprep.subr.bf16.mxu0 %v1301_v38 }
  0x2a   : > { %1187 = vmatprep.subr.bf16.mxu1 %v1395_v4  ;;  %771 = vmatprep.mubr.bf16.mxu0 %v1317_v47 }
  0x2b   : > { %850 = vmatprep.mubr.bf16.mxu1 %v1320_v48 }
  0x2c   : > { %1166 = vmatpush3.bf16.msra.mxu0 %v1302_v39 }
  0x2d   : > { %1188 = vmatpush3.bf16.msra.mxu1 %v1407_v6  ;;  %1167 = vmatprep.subr.bf16.mxu0 %v1303_v40 }
  0x2e   : > { %1189 = vmatprep.subr.bf16.mxu1 %v1419_v8 }
  0x30   : > { %1168 = vmatpush3.bf16.msra.mxu0 %v1304_v41 }
  0x31   : > { %1190 = vmatpush3.bf16.msra.mxu1 %v1431_v10  ;;  %1169 = vmatprep.subr.bf16.mxu0 %v1305_v42 }
  0x32   : > { %1191 = vmatprep.subr.bf16.mxu1 %v1443_v12 }
  0x34   : > { %1170 = vmatpush3.bf16.msra.mxu0 %v1306_v43 }
  0x35   : > { %1192 = vmatpush3.bf16.msra.mxu1 %v1455_v14  ;;  %1171 = vmatprep.subr.bf16.mxu0 %v1307_v44 }
  0x36   : > { %1193 = vmatprep.subr.bf16.mxu1 %v1469_v16 }
  0x38   : > { %1172 = vmatpush3.bf16.msra.mxu0 %v1308_v45 }
  0x39   : > { %1194 = vmatpush3.bf16.msra.mxu1 %v1481_v18  ;;  %1173 = vmatprep.subr.bf16.mxu0 %v1309_v46 }
  0x3a   : > { %1195 = vmatprep.subr.bf16.mxu1 %v1493_v20 }
  0x3c   : > { %1174 = vmatpush3.bf16.msra.mxu0 %v1310_v49 }
  0x3d   : > { %1196 = vmatpush3.bf16.msra.mxu1 %v1507_v22  ;;  %1175 = vmatprep.subr.bf16.mxu0 %v1311_v50 }
  0x3e   : > { %1197 = vmatprep.subr.bf16.mxu1 %v1519_v24 }
  0x40   : > { %1176 = vmatpush3.bf16.msra.mxu0 %v1312_v51 }
  0x41   : > { %1198 = vmatpush3.bf16.msra.mxu1 %v1532_v26  ;;  %1177 = vmatprep.subr.bf16.mxu0 %v1313_v52 }
  0x42   : > { %1199 = vmatprep.subr.bf16.mxu1 %v1544_v28 }
  0x44   : > { %1178 = vmatpush3.bf16.msra.mxu0 %v1314_v53 }
  0x45   : > { %1200 = vmatpush3.bf16.msra.mxu1 %v1563_v30  ;;  %1207 = vmatprep.subr.bf16.mxu0 %v1377_v1 }
  0x46   : > { %1229 = vmatprep.subr.bf16.mxu1 %v1299_v36 }
  0x47   : > { %772 = vmatmul.mubr.bf16.vlgmr.msra.gmra.mrb[4].mxu0 %v1315_v54 }
  0x48   : > { %851 = vmatmul.mubr.bf16.vlgmr.msra.gmra.mrb[4].mxu1 %v1318_v55  ;;  %1208 = vmatpush3.bf16.msra.mxu0 %v1389_v3 }
  0x49   : > { %1230 = vmatpush3.bf16.msra.mxu1 %v1300_v37  ;;  %1209 = vmatprep.subr.bf16.mxu0 %v1401_v5 }
  0x4a   : > { %1231 = vmatprep.subr.bf16.mxu1 %v1301_v38  ;;  %891 = vmatprep.mubr.bf16.mxu0 %v1323_v56 }
  0x4b   : > { %932 = vmatprep.mubr.bf16.mxu1 %v1326_v57 }
  0x4c   : > { %1210 = vmatpush3.bf16.msra.mxu0 %v1413_v7 }
  0x4d   : > { %1232 = vmatpush3.bf16.msra.mxu1 %v1302_v39  ;;  %1211 = vmatprep.subr.bf16.mxu0 %v1425_v9 }
  0x4e   : > { %1233 = vmatprep.subr.bf16.mxu1 %v1303_v40 }
  0x50   : > { %1212 = vmatpush3.bf16.msra.mxu0 %v1437_v11 }
  0x51   : > { %1234 = vmatpush3.bf16.msra.mxu1 %v1304_v41  ;;  %1213 = vmatprep.subr.bf16.mxu0 %v1449_v13 }
  0x52   : > { %1235 = vmatprep.subr.bf16.mxu1 %v1305_v42 }
  0x54   : > { %1214 = vmatpush3.bf16.msra.mxu0 %v1463_v15 }
  0x55   : > { %1236 = vmatpush3.bf16.msra.mxu1 %v1306_v43  ;;  %1215 = vmatprep.subr.bf16.mxu0 %v1475_v17 }
  0x56   : > { %1237 = vmatprep.subr.bf16.mxu1 %v1307_v44 }
  0x58   : > { %1216 = vmatpush3.bf16.msra.mxu0 %v1487_v19 }
  0x59   : > { %1238 = vmatpush3.bf16.msra.mxu1 %v1308_v45  ;;  %1217 = vmatprep.subr.bf16.mxu0 %v1499_v21 }
  0x5a   : > { %1239 = vmatprep.subr.bf16.mxu1 %v1309_v46 }
  0x5c   : > { %1218 = vmatpush3.bf16.msra.mxu0 %v1513_v23 }
  0x5d   : > { %1240 = vmatpush3.bf16.msra.mxu1 %v1310_v49  ;;  %1219 = vmatprep.subr.bf16.mxu0 %v1525_v25 }
  0x5e   : > { %1241 = vmatprep.subr.bf16.mxu1 %v1311_v50 }
  0x60   : > { %1220 = vmatpush3.bf16.msra.mxu0 %v1538_v27 }
  0x61   : > { %1242 = vmatpush3.bf16.msra.mxu1 %v1312_v51  ;;  %1221 = vmatprep.subr.bf16.mxu0 %v1550_v29 }
  0x62   : > { %1243 = vmatprep.subr.bf16.mxu1 %v1313_v52 }
  0x64   : > { %1222 = vmatpush3.bf16.msra.mxu0 %v1569_v31 }
  0x65   : > { %1244 = vmatpush3.bf16.msra.mxu1 %v1314_v53 }
  0x67   : > { %892 = vmatmul.mubr.bf16.vlgmr.msra.gmra.mrb[8].mxu0 %v1321_v58 }
  0x68   : > { %933 = vmatmul.mubr.bf16.vlgmr.msra.gmra.mrb[8].mxu1 %v1324_v59 }
  0xfa   : > { %v1135_v60 = vpop.f32.mrb[0].mxu0 }
  0xfb   : > { %v1157_v61 = vpop.f32.mrb[0].mxu1  ;;  %v1136_v63 = vpop.f32.mrb[1].mxu0 }
  0xfc   : > { %v1137_v0 = vadd.f32 %v1136_v63, %v1135_v60  ;;  %v1158_v1 = vpop.f32.mrb[1].mxu1  ;;  %v1138_v2 = vpop.f32.mrb[2].mxu0 }
  0xfd   : > { %v1159_v3 = vadd.f32 %v1158_v1, %v1157_v61  ;;  %v1160_v4 = vpop.f32.mrb[2].mxu1  ;;  %v1139_v5 = vpop.f32.mrb[3].mxu0 }
  0xfe   : > { %v692_v6 = vadd.f32 %v1137_v0, %v1048_v62  ;;  %v1140_v7 = vadd.f32 %v1139_v5, %v1138_v2  ;;  %v1161_v8 = vpop.f32.mrb[3].mxu1 }
  0xff   : > { %v1162_v9 = vadd.f32 %v1161_v8, %v1160_v4 }
 0x100   : > { %v733_v10 = vadd.f32 %v1159_v3, %v692_v6  ;;  %v695_v11 = vadd.f32 %v1140_v7, %v1048_v62 }
 0x102   : > { %v736_v12 = vadd.f32 %v1162_v9, %v695_v11 }
 0x11a   : > { %v1179_v13 = vpop.f32.mrb[4].mxu0 }
 0x11b   : > { %v1201_v14 = vpop.f32.mrb[4].mxu1  ;;  %v1180_v15 = vpop.f32.mrb[5].mxu0 }
 0x11c   : > { %v1202_v16 = vpop.f32.mrb[5].mxu1  ;;  %v1181_v17 = vadd.f32 %v1180_v15, %v1179_v13  ;;  %v1182_v19 = vpop.f32.mrb[6].mxu0 }
 0x11d   : > { %v1203_v18 = vadd.f32 %v1202_v16, %v1201_v14  ;;  %v1204_v20 = vpop.f32.mrb[6].mxu1  ;;  %v1183_v21 = vpop.f32.mrb[7].mxu0 }
 0x11e   : > { %v1205_v22 = vpop.f32.mrb[7].mxu1  ;;  %v774_v23 = vadd.f32 %v1181_v17, %v733_v10  ;;  %v1184_v24 = vadd.f32 %v1183_v21, %v1182_v19 }
 0x11f   : > { %v1206_v25 = vadd.f32 %v1205_v22, %v1204_v20  ;;  %v853_v35 = vadd.f32 %v1203_v18, %v1048_v62 }
 0x120   : > { %v780_v26 = vmax.f32 %v774_v23, 0.0  ;;  %v777_v27 = vadd.f32 %v1184_v24, %v736_v12 }
 0x121   : > { %v856_v42 = vadd.f32 %v1206_v25, %v1048_v62 }
 0x122   : > { %v1115_v28 = vpack.c.bf16 %v780_v26, %v780_v26  ;;  %v781_v29 = vmax.f32 %v777_v27, 0.0 }
 0x124   : > { %952 = vst.msk [vmem:[%s1679_s30] sm:$0xf] %vm951_vm0, %v1115_v28  ;;  %v1116_v30 = vpack.c.bf16 %v781_v29, %v781_v29 }
 0x126   : > { %953 = vst.msk [vmem:[%s1679_s30 + $0x4] sm:$0xf] %vm951_vm0, %v1116_v30 }
 0x13a   : > { %v1223_v31 = vpop.f32.mrb[8].mxu0 }
 0x13b   : > { %v1245_v32 = vpop.f32.mrb[8].mxu1  ;;  %v1224_v33 = vpop.f32.mrb[9].mxu0 }
 0x13c   : > { %v1246_v34 = vpop.f32.mrb[9].mxu1  ;;  %v1225_v36 = vadd.f32 %v1224_v33, %v1223_v31  ;;  %v1226_v38 = vpop.f32.mrb[10].mxu0 }
 0x13d   : > { %v1247_v37 = vadd.f32 %v1246_v34, %v1245_v32  ;;  %v1248_v39 = vpop.f32.mrb[10].mxu1  ;;  %v1227_v40 = vpop.f32.mrb[11].mxu0 }
 0x13e   : > { %v1249_v41 = vpop.f32.mrb[11].mxu1  ;;  %v894_v43 = vadd.f32 %v1225_v36, %v853_v35  ;;  %v1228_v44 = vadd.f32 %v1227_v40, %v1226_v38 }
 0x13f   : > { %v1250_v45 = vadd.f32 %v1249_v41, %v1248_v39 }
 0x140   : > { %v897_v46 = vadd.f32 %v1228_v44, %v856_v42  ;;  %v935_v47 = vadd.f32 %v1247_v37, %v894_v43 }
 0x142   : > { %v938_v48 = vadd.f32 %v1250_v45, %v897_v46  ;;  %v941_v49 = vmax.f32 %v935_v47, 0.0 }
 0x144   : > { %v942_v50 = vmax.f32 %v938_v48, 0.0  ;;  %v1117_v51 = vpack.c.bf16 %v941_v49, %v941_v49 }
 0x146   : > { %960 = vrot.lane.b32.xlu0 %v1117_v51, %s1335_s23  ;;  %v1118_v52 = vpack.c.bf16 %v942_v50, %v942_v50 }
 0x14a   : > { %962 = vrot.lane.b32.xlu0 %v1118_v52, %s1335_s23 }
 0x1b8   : > { %v961_v53 = vpop.permute.xlu0 %960 }
 0x1b9   : > { %967 = vst.msk [vmem:[%s1679_s30] sm:$0xf] %vm966_vm1, %v961_v53 }
 0x1bc   : > { %v963_v54 = vpop.permute.xlu0 %962 }
 0x1bd   : > { %968 = vst.msk [vmem:[%s1679_s30 + $0x4] sm:$0xf] %vm966_vm1, %v963_v54 }
 0x1be PF: > { %s14_s15 = sadd.s32 1, %s1333_s15  }
 0x1bf   : > { %p11_p4 = scmp.ge.s32.totalorder %s14_s15, 4  }
 0x1c1   :  { %13 = sbr.rel (!%p11_p4) target bundleno = 1 (0x1), region = 69 }

// kernel: radio_mamba_cd_forward.3
= control target key start
LH: loop header
LB: loop body
LE: loop exit
PB: predicated region body
PF: predicated region fallthrough
CT: control target
= control target key end

     0   :  { %s3458_s0 = inlined_call_operand.vmem [shape: bf16[2,6,6,128], index: 0, kind: input, shape index: {}]   ;;  %s3459_s1 = inlined_call_operand.vmem [shape: bf16[9,128,64], index: 1, kind: input, shape index: {}]   ;;  %s3460_s2 = inlined_call_operand.vmem [shape: f32[1,64], index: 2, kind: input, shape index: {}]   ;;  %s3461_s3 = inlined_call_operand.vmem [shape: f32[1,1,64], index: 3, kind: input, shape index: {}]   ;;  %s3462_s4 = inlined_call_operand.vmem [shape: f32[64,4], index: 4, kind: input, shape index: {}]   ;;  %s3463_s5 = inlined_call_operand.vmem [shape: f32[4,64], index: 5, kind: input, shape index: {}]   ;;  %s3464_s6 = inlined_call_operand.<no memory space> [shape: f32[1], index: 6, kind: input, shape index: {}]   ;;  %s3465_s7 = inlined_call_operand.hbm [shape: f32[2,64,64], index: 7, kind: output, shape index: {}]  }
   0x1   :  { %12 = sst [smem:[#allocation2]] %s3464_s6 }
   0x2   :  { %13 = vsyncpa [#allocation4], 0 }
   0x3   :  { %15 = vsyncpa [#allocation4 + $0x1], 0  ;;  %s2776_s26 = smov 0   ;;  %s2778_s27 = smov 0  }
   0x4   :  { %s2780_s28 = smov 0   ;;  %s2782_s29 = smov 0  }
   0x5 LB: > { %s2797_s6 = sadd.s32 4294967295, %s2725_s29   ;;  %s1996_s30 = sadd.s32 4294967294, %s2725_s29   ;;  %s2725_s29 = sphi %s2782_s29, %s3477_s29   ;;  %s2721_s28 = sphi %s2780_s28, %s3476_s28   ;;  %s2717_s27 = sphi %s2778_s27, %s3475_s27   ;;  %s2713_s26 = sphi %s2776_s26, %s3474_s26  }
   0x6   : > { %s2801_s8 = sadd.s32 1, %s2725_s29   ;;  %s180_s9 = sadd.s32 1, %s2721_s28 }
   0x7   : > { %s177_s10 = ssub.s32 %s2725_s29, %s2801_s8  ;;  %p190_p0 = scmp.ne.s32.totalorder %s2721_s28, %s2717_s27 }
   0x8   : > { %p178_p1 = scmp.eq.s32.totalorder %s177_s10, 0  ;;  %p191_p2 = scmp.eq.s32.totalorder %s2797_s6, 1 }
   0x9   : > { %p196_p3 = scmp.ne.s32.totalorder %s2717_s27, %s2713_s26  ;;  %p197_p4 = scmp.eq.s32.totalorder %s1996_s30, 1 }
   0xa   : > { %s2812_s11 = scalar_select %p178_p1, %s2721_s28, %s180_s9  }
   0xb   : > { %p2814_p5 = por %p191_p2, %p190_p0  ;;  %p2818_p6 = por %p197_p4, %p196_p3 }
   0xc   : > { %p1999_p7 = scmp.ge.s32.totalorder %s2725_s29, 1  ;;  %p241_p8 = scmp.lt.s32.totalorder %s2725_s29, 3 }
   0xe   : > { %p242_p9 = pnand %p1999_p7, %p241_p8 }
   0xf   : > { %v2586_v0 = vld [vmem:[%s3459_s1 + $0x40] sm:$0xff] (!%p242_p9)   ;;  %v2727_v1 = vmov (!%p242_p9), 0.0   ;;  %v2588_v3 = vld [vmem:[%s3459_s1 + $0x48] sm:$0xff] (!%p242_p9)   ;;  %vm2728_vm0 = vmmov (!%p242_p9), 0   ;;  %p273_p10 = scmp.lt.s32.totalorder (!%p242_p9), %s2797_s6, 1  ;;  %v2590_v5 = vld [vmem:[%s3459_s1 + $0x50] sm:$0xff] (!%p242_p9)   ;;  %v308_v10 = vlaneseq (!%p242_p9) }
  0x10   : > { %245 = sbr.rel (%p242_p9) target bundleno = 1010 (0x3f2), region = 48  ;;  %2333 = vmatprep.subr.bf16.mxu0 (!%p242_p9), %v2727_v1  ;;  %2353 = vmatprep.subr.bf16.mxu1 (!%p242_p9), %v2727_v1  ;;  %v2587_v2 = vld [vmem:[%s3459_s1] sm:$0xff] (!%p242_p9)   ;;  %v2589_v4 = vld [vmem:[%s3459_s1 + $0x8] sm:$0xff] (!%p242_p9)   ;;  %v2591_v6 = vld [vmem:[%s3459_s1 + $0x10] sm:$0xff] (!%p242_p9)   ;;  %v2729_v15 = vmov (!%p242_p9), 1983009808  }
  0x11   : > { %2334 = vmatpush3.bf16.msra.mxu0 (!%p242_p9), %v2586_v0  ;;  %2349 = vmatprep.mubr.msk.bf16.mxu0 (!%p242_p9), %vm2728_vm0, %v2727_v1  ;;  %v2592_v7 = vld [vmem:[%s3459_s1 + $0x58] sm:$0xff] (!%p242_p9)   ;;  %v2594_v9 = vld [vmem:[%s3459_s1 + $0x60] sm:$0xff] (!%p242_p9)   ;;  %v2596_v12 = vld [vmem:[%s3459_s1 + $0x68] sm:$0xff] (!%p242_p9)   ;;  %v306_v16 = vunpack.c.l.s4 (!%p242_p9), %v2729_v15  ;;  %v2883_v17 = vshrl.u32 (!%p242_p9), %v308_v10, 7  ;;  %vm337_vm1 = vsmask.f32 (!%p242_p9), 1280 }
  0x12   : > { %2354 = vmatpush3.bf16.msra.mxu1 (!%p242_p9), %v2587_v2  ;;  %2335 = vmatprep.subr.bf16.mxu0 (!%p242_p9), %v2727_v1  ;;  %v2593_v8 = vld [vmem:[%s3459_s1 + $0x18] sm:$0xff] (!%p242_p9)   ;;  %v2595_v11 = vld [vmem:[%s3459_s1 + $0x20] sm:$0xff] (!%p242_p9)   ;;  %v2597_v13 = vld [vmem:[%s3459_s1 + $0x28] sm:$0xff] (!%p242_p9)   ;;  %vm338_vm2 = vsmask.f32 (!%p242_p9), 3336  ;;  %vm631_vm8 = vcmask (!%p242_p9), 1040384  }
  0x13   : > { %2355 = vmatprep.subr.bf16.mxu1 (!%p242_p9), %v2727_v1  ;;  %2369 = vmatprep.mubr.msk.bf16.mxu1 (!%p242_p9), %vm2728_vm0, %v2727_v1  ;;  %v307_v21 = vunpack.c.0.s8 (!%p242_p9), %v306_v16  ;;  %v2598_v22 = vld [vmem:[%s3459_s1 + $0x70] sm:$0xff] (!%p242_p9)   ;;  %vm340_vm3 = vsmask.f32 (!%p242_p9), 5392  ;;  %v2600_v27 = vld [vmem:[%s3459_s1 + $0x78] sm:$0xff] (!%p242_p9)   ;;  %vm342_vm4 = vsmask.f32 (!%p242_p9), 7448  ;;  %vm339_vm5 = vmor (!%p242_p9), %vm337_vm1, %vm338_vm2 }
  0x14   : > { %v2599_v23 = vld [vmem:[%s3459_s1 + $0x30] sm:$0xff] (!%p242_p9)   ;;  %v2601_v33 = vld [vmem:[%s3459_s1 + $0x38] sm:$0xff] (!%p242_p9)   ;;  %vm2973_vm6 = vmor (!%p242_p9), %vm339_vm5, %vm340_vm3  ;;  %vm632_vm9 = vcmask (!%p242_p9), 1042434   ;;  %vm634_vm11 = vcmask (!%p242_p9), 1044484   ;;  %vm636_vm12 = vcmask (!%p242_p9), 1046534   ;;  %vm1594_vm15 = vcmask (!%p242_p9), 519168  }
  0x15   : > { %2336 = vmatpush3.bf16.msra.mxu0 (!%p242_p9), %v2588_v3  ;;  %v2906_v26 = vsub.s32 (!%p242_p9), %v307_v21, %v2883_v17  ;;  %vm2983_vm7 = vmor (!%p242_p9), %vm2973_vm6, %vm342_vm4  ;;  %v2633_v62 = vld [vmem:[%s3459_s1 + $0x168] sm:$0xff] (!%p242_p9)   ;;  %vm1637_vm1 = vcmask (!%p242_p9), 1041409   ;;  %vm1641_vm2 = vcmask (!%p242_p9), 1043459   ;;  %vm1668_vm3 = vcmask (!%p242_p9), 1043456   ;;  %s1777_s22 = sld [smem:[#allocation2]] (!%p242_p9)  ;;  %s270_s24 = sand.u32 (!%p242_p9), 1, %s2717_s27  }
  0x16   : > { %2356 = vmatpush3.bf16.msra.mxu1 (!%p242_p9), %v2589_v4  ;;  %2337 = vmatprep.subr.bf16.mxu0 (!%p242_p9), %v2727_v1  ;;  %vm633_vm10 = vmor (!%p242_p9), %vm631_vm8, %vm632_vm9  ;;  %s2000_s25 = sshll.u32 (!%p242_p9), %s270_s24, 6  ;;  %vm1911_vm4 = vcmask (!%p242_p9), 523264   ;;  %s2233_s9 = sshll.u32 (!%p242_p9), %s2797_s6, 10 }
  0x17   : > { %s274_s30 = scalar_select %p273_p10, %s2797_s6, 1  ;;  %2357 = vmatprep.subr.bf16.mxu1 %v2727_v1  ;;  %vm635_vm13 = vmor %vm633_vm10, %vm634_vm11 }
  0x18   : > { %vm3085_vm14 = vmor %vm635_vm13, %vm636_vm12  ;;  %s3417_s6 = scalar_lea.sflag [#allocation4], %s270_s24  ;;  %s2730_s18 = smov [#allocation3]  }
  0x19   : > { %2338 = vmatpush3.bf16.msra.mxu0 %v2590_v5  ;;  %s2541_s16 = smul.u32 24, %s274_s30  ;;  %s272_s30 = scalar_lea.vmem [#allocation3], %s2000_s25 }
  0x1a   : > { %2358 = vmatpush3.bf16.msra.mxu1 %v2591_v6  ;;  %2339 = vmatprep.subr.bf16.mxu0 %v2727_v1  ;;  %s1934_s10 = sshll.u32 %s272_s30, 4  ;;  %s3411_s10 = int_to_ptr.vmem [resolvable:$true] %s1934_s10 }
  0x1b   : > { %2359 = vmatprep.subr.bf16.mxu1 %v2727_v1  ;;  %s2872_s23 = scalar_lea.vmem %s3458_s0, %s2541_s16  ;;  %s3409_s16 = scalar_lea.hbm %s3465_s7, %s2233_s9 }
  0x1c   : > { %v279_v14 = vld [vmem:[%s2872_s23] sm:$0x7]  ;;  %v2887_v18 = vld [vmem:[%s2872_s23 + $0x4] sm:$0x7]  ;;  %v2891_v19 = vld [vmem:[%s2872_s23 + $0x8] sm:$0x7] }
  0x1d   : > { %2340 = vmatpush3.bf16.msra.mxu0 %v2592_v7  ;;  %v2894_v20 = vld [vmem:[%s2872_s23 + $0xc] sm:$0x7]  ;;  %v524_v24 = vcombine.low %v279_v14, %v2887_v18  ;;  %v2914_v28 = vld [vmem:[%s2872_s23 + $0x10] sm:$0x7]  ;;  %v2917_v29 = vrot.slane %v279_v14, %v2906_v26  ;;  %v2921_v30 = vrot.slane %v2887_v18, %v2906_v26  ;;  %v2925_v31 = vrot.slane %v2891_v19, %v2906_v26  ;;  %s2663_s17 = scalar_lea.vmem %s3411_s10, 1024 }
  0x1e   : > { %2360 = vmatpush3.bf16.msra.mxu1 %v2593_v8  ;;  %2341 = vmatprep.subr.bf16.mxu0 %v2727_v1  ;;  %v525_v25 = vcombine.low %v2891_v19, %v2894_v20  ;;  %v2929_v32 = vrot.slane %v2894_v20, %v2906_v26  ;;  %v2936_v34 = vrot.slane %v2914_v28, %v2906_v26  ;;  %p2664_p11 = scmp.ne.s32.totalorder %s3411_s10, %s2663_s17 }
  0x1f   : > { %2361 = vmatprep.subr.bf16.mxu1 %v2727_v1  ;;  %v2939_v35 = vrot.slane %v524_v24, %v2906_v26  ;;  %v2946_v37 = vcombine.high %v2917_v29, %v2917_v29  ;;  %v2950_v38 = vcombine.high %v2921_v30, %v2921_v30  ;;  %v2954_v39 = vcombine.high %v2925_v31, %v2925_v31 }
  0x20   : > { %v2942_v36 = vrot.slane %v525_v25, %v2906_v26  ;;  %v2958_v40 = vcombine.high %v2929_v32, %v2929_v32  ;;  %v345_v41 = vshrl.u32 %v2917_v29, 16  ;;  %v348_v42 = vshll.u32 %v2917_v29, 16  ;;  %p2665_p12 = pnand %p2664_p11, %p2814_p5 }
  0x21   : > { %2342 = vmatpush3.bf16.msra.mxu0 %v2594_v9  ;;  %v359_v43 = vshrl.u32 %v2921_v30, 16  ;;  %v362_v44 = vshll.u32 %v2921_v30, 16  ;;  %v354_v45 = vshll.u32 %v2946_v37, 16  ;;  %v368_v46 = vshll.u32 %v2950_v38, 16 }
  0x22   : > { %2362 = vmatpush3.bf16.msra.mxu1 %v2595_v11  ;;  %2343 = vmatprep.subr.bf16.mxu0 %v2727_v1  ;;  %v373_v47 = vshrl.u32 %v2925_v31, 16  ;;  %v376_v48 = vshll.u32 %v2925_v31, 16  ;;  %v347_v50 = vrot.slane %v345_v41, 6  ;;  %v350_v51 = vrot.slane %v348_v42, 7  ;;  %p2666_p13 = pneg %p2665_p12 }
  0x23   : > { %2363 = vmatprep.subr.bf16.mxu1 %v2727_v1  ;;  %v361_v52 = vrot.slane %v359_v43, 6  ;;  %v364_v53 = vrot.slane %v362_v44, 7  ;;  %v356_v54 = vrot.slane %v354_v45, 7  ;;  %v370_v55 = vrot.slane %v368_v46, 7 }
  0x24   : > { %v375_v56 = vrot.slane %v373_v47, 6  ;;  %v378_v57 = vrot.slane %v376_v48, 7  ;;  %v351_v58 = vor.u32 %v350_v51, %v347_v50  ;;  %v382_v60 = vshll.u32 %v2954_v39, 16  ;;  %v2607_v47 = vld [vmem:[%s3459_s1 + $0xc8] sm:$0xff]   ;;  %v2604_v50 = vld [vmem:[%s3459_s1 + $0x80] sm:$0xff]  }
  0x25   : > { %2344 = vmatpush3.bf16.msra.mxu0 %v2596_v12  ;;  %v365_v59 = vor.u32 %v364_v53, %v361_v52  ;;  %v387_v61 = vshrl.u32 %v2929_v32, 16  ;;  %v390_v0 = vshll.u32 %v2929_v32, 16  ;;  %v396_v2 = vshll.u32 %v2958_v40, 16  ;;  %v2605_v12 = vld [vmem:[%s3459_s1 + $0xc0] sm:$0xff]  }
  0x26   : > { %2364 = vmatpush3.bf16.msra.mxu1 %v2597_v13  ;;  %2345 = vmatprep.subr.bf16.mxu0 %v2727_v1  ;;  %v379_v63 = vor.u32 %v378_v57, %v375_v56  ;;  %v2991_v3 = vcombine.high %v2936_v34, %v2936_v34  ;;  %v352_v4 = vrot.slane %v351_v58, 2  ;;  %v384_v6 = vrot.slane %v382_v60, 7  ;;  %v2606_v57 = vld [vmem:[%s3459_s1 + $0x88] sm:$0xff]   ;;  %v2611_v58 = vld [vmem:[%s3459_s1 + $0xd8] sm:$0xff]   ;;  %v2608_v60 = vld [vmem:[%s3459_s1 + $0x90] sm:$0xff]  }
  0x27   : > { %2365 = vmatprep.subr.bf16.mxu1 %v2727_v1  ;;  %v366_v5 = vrot.slane %v365_v59, 2  ;;  %v389_v7 = vrot.slane %v387_v61, 6  ;;  %v392_v9 = vrot.slane %v390_v0, 7  ;;  %v916_v11 = vshrl.u32 %v2936_v34, 16  ;;  %v2613_v61 = vld [vmem:[%s3459_s1 + $0xe0] sm:$0xff]   ;;  %v2615_v0 = vld [vmem:[%s3459_s1 + $0xe8] sm:$0xff]  }
  0x28   : > { %v380_v8 = vrot.slane %v379_v63, 2  ;;  %v357_v13 = vsel %vm2983_vm7, %v352_v4, %v356_v54  ;;  %v919_v15 = vshll.u32 %v2936_v34, 16  ;;  %v925_v16 = vshll.u32 %v2991_v3, 16  ;;  %v2609_v54 = vld [vmem:[%s3459_s1 + $0xd0] sm:$0xff]   ;;  %v2610_v63 = vld [vmem:[%s3459_s1 + $0x98] sm:$0xff]  }
  0x29   : > { %2346 = vmatpush3.bf16.msra.mxu0 %v2598_v22  ;;  %v371_v14 = vsel %vm2983_vm7, %v366_v5, %v370_v55  ;;  %v393_v22 = vor.u32 %v392_v9, %v389_v7  ;;  %v918_v24 = vrot.slane %v916_v11, 6  ;;  %v540_v41 = vcombine.low %v2939_v35, %v2942_v36  ;;  %v2612_v5 = vld [vmem:[%s3459_s1 + $0xa0] sm:$0xff]  }
  0x2a   : > { %2366 = vmatpush3.bf16.msra.mxu1 %v2599_v23  ;;  %2347 = vmatprep.subr.bf16.mxu0 %v2727_v1  ;;  %v385_v21 = vsel %vm2983_vm7, %v380_v8, %v384_v6  ;;  %v398_v23 = vrot.slane %v396_v2, 7  ;;  %v417_v25 = vcombine.low %v357_v13, %v371_v14  ;;  %v927_v43 = vrot.slane %v925_v16, 7  ;;  %v2617_v6 = vld [vmem:[%s3459_s1 + $0xf0] sm:$0xff]  }
  0x2b   : > { %2367 = vmatprep.subr.bf16.mxu1 %v2727_v1  ;;  %v394_v42 = vrot.slane %v393_v22, 2  ;;  %v2034_v2 = vrot.slane %v2917_v29, 9  ;;  %v640_v4 = vrot.slane %v2946_v37, 7  ;;  %v2035_v7 = vrot.slane %v2921_v30, 9  ;;  %v2623_v22 = vld [vmem:[%s3459_s1 + $0x140] sm:$0xff]  }
  0x2c   : > { %v425_v35 = vrot.slane %v417_v25, %v2906_v26  ;;  %v644_v8 = vrot.slane %v2950_v38, 7  ;;  %v2036_v9 = vrot.slane %v2925_v31, 9  ;;  %v648_v11 = vrot.slane %v2954_v39, 7 }
  0x2d   : > { %2348 = vmatpush3.bf16.msra.mxu0 %v2600_v27  ;;  %v921_v27 = vrot.slane %v919_v15, 7  ;;  %v399_v46 = vsel %vm2983_vm7, %v394_v42, %v398_v23  ;;  %v798_v29 = vcombine.low %v2887_v18, %v2891_v19  ;;  %v799_v37 = vcombine.low %v2894_v20, %v2914_v28  ;;  %v2614_v18 = vld [vmem:[%s3459_s1 + $0xa8] sm:$0xff]   ;;  %v2618_v23 = vld [vmem:[%s3459_s1 + $0xb8] sm:$0xff]  }
  0x2e   : > { %2368 = vmatpush3.bf16.msra.mxu1 %v2601_v33  ;;  %2373 = vmatprep.subr.bf16.mxu0 %v2727_v1  ;;  %v946_v33 = vcombine.low %v371_v14, %v385_v21  ;;  %v418_v48 = vcombine.low %v385_v21, %v399_v46  ;;  %v2037_v30 = vrot.slane %v2929_v32, 9  ;;  %v652_v38 = vrot.slane %v2958_v40, 7  ;;  %v2619_v32 = vld [vmem:[%s3459_s1 + $0xf8] sm:$0xff]   ;;  %v2616_v14 = vld [vmem:[%s3459_s1 + $0xb0] sm:$0xff]  }
  0x2f   : > { %2393 = vmatprep.subr.bf16.mxu1 %v2727_v1  ;;  %v922_v44 = vor.u32 %v921_v27, %v918_v24  ;;  %v641_v19 = vsel %vm3085_vm14, %v2034_v2, %v640_v4  ;;  %v806_v20 = vrot.slane %v798_v29, %v2906_v26  ;;  %v813_v31 = vrot.slane %v799_v37, %v2906_v26  ;;  %v2625_v27 = vld [vmem:[%s3459_s1 + $0x148] sm:$0xff]   ;;  %v2628_v37 = vld [vmem:[%s3459_s1 + $0x118] sm:$0xff]  }
  0x30   : > { %v3009_v45 = vrot.slane %v946_v33, %v2906_v26  ;;  %v3024_v51 = vrot.slane %v418_v48, %v2906_v26  ;;  %v3105_v39 = vsel %vm3085_vm14, %v2035_v7, %v644_v8  ;;  %v3109_v40 = vsel %vm3085_vm14, %v2036_v9, %v648_v11  ;;  %v284_v33 = vld [vmem:[%s2872_s23 + $0x14] sm:$0x7]  ;;  %s2667_s23 = sshll.u32 %s2730_s18, 4  ;;  %s2668_s23 = int_to_ptr.vmem [resolvable:$false] %s2667_s23 }
  0x31   : > { %2370 = vmatmul.mubr.bf16.vlgmr.msra.gmra.mrb[0].mxu1 %v540_v41  ;;  %v923_v49 = vrot.slane %v922_v44, 2  ;;  %v3113_v13 = vsel %vm3085_vm14, %v2037_v30, %v652_v38  ;;  %v671_v15 = vcombine.low %v641_v19, %v3105_v39  ;;  %v814_v21 = vcombine.low %v806_v20, %v813_v31  ;;  %v2635_v19 = vld [vmem:[%s3459_s1 + $0x170] sm:$0xff]   ;;  %v2632_v31 = vld [vmem:[%s3459_s1 + $0x128] sm:$0xff]   ;;  %s2669_s19 = scalar_lea.vmem %s2668_s23, 2048  ;;  %p2670_p0 = scmp.lt.s32.totalorder %s3411_s10, %s2668_s23 }
  0x32   : > { %2394 = vmatpush3.bf16.msra.mxu1 %v2605_v12  ;;  %2409 = vmatprep.mubr.msk.bf16.mxu1 %vm2728_vm0, %v2727_v1  ;;  %v433_v55 = vcombine.low %v425_v35, %v3024_v51  ;;  %v672_v16 = vcombine.low %v3109_v40, %v3113_v13  ;;  %v1203_v41 = vcombine.low %v2914_v28, %v284_v33  ;;  %v2110_v44 = vrot.slane %v2936_v34, 9  ;;  %v2624_v34 = vld [vmem:[%s3459_s1 + $0x108] sm:$0xff]   ;;  %p2671_p1 = scmp.lt.s32.totalorder %s2669_s19, %s2663_s17 }
  0x33   : > { %2395 = vmatprep.subr.bf16.mxu1 %v2727_v1  ;;  %v3028_v52 = vsel %vm2983_vm7, %v923_v49, %v927_v43  ;;  %v679_v24 = vrot.slane %v671_v15, %v2906_v26  ;;  %v1310_v42 = vrot.slane %v284_v33, %v2906_v26  ;;  %v1076_v30 = vcombine.low %v3105_v39, %v3109_v40  ;;  %v2639_v40 = vld [vmem:[%s3459_s1 + $0x1c0] sm:$0xff]   ;;  %v2648_v33 = vld [vmem:[%s3459_s1 + $0x1a8] sm:$0xff]  }
  0x34   : > { %v947_v53 = vcombine.low %v399_v46, %v3028_v52  ;;  %2350 = vmatmul.mubr.bf16.vlgmr.msra.gmra.mrb[0].mxu0 %v433_v55  ;;  %v3133_v25 = vrot.slane %v672_v16, %v2906_v26  ;;  %v2620_v46 = vld [vmem:[%s3459_s1 + $0x100] sm:$0xff]   ;;  %v3154_v48 = vrot.slane %v1203_v41, %v2906_v26  ;;  %v2643_v16 = vld [vmem:[%s3459_s1 + $0x1d0] sm:$0xff]   ;;  %v2653_v41 = vld [vmem:[%s3459_s1 + $0x1f8] sm:$0xff]   ;;  %p2672_p2 = por %p2671_p1, %p2670_p0 }
  0x35   : > { %2374 = vmatpush3.bf16.msra.mxu0 %v2604_v50  ;;  %2389 = vmatprep.mubr.msk.bf16.mxu0 %vm2728_vm0, %v2727_v1  ;;  %v1311_v28 = vcombine.high %v1310_v42, %v1310_v42  ;;  %v1313_v35 = vshrl.u32 %v1310_v42, 16  ;;  %v1316_v49 = vshll.u32 %v1310_v42, 16  ;;  %v2638_v15 = vld [vmem:[%s3459_s1 + $0x180] sm:$0xff]  }
  0x36   : > { %2396 = vmatpush3.bf16.msra.mxu1 %v2607_v47  ;;  %v3037_v56 = vrot.slane %v947_v53, %v2906_v26  ;;  %2375 = vmatprep.subr.bf16.mxu0 %v2727_v1  ;;  %v687_v43 = vcombine.low %v679_v24, %v3133_v25  ;;  %v2627_v47 = vld [vmem:[%s3459_s1 + $0x150] sm:$0xff]   ;;  %v1211_v50 = vcombine.low %v2942_v36, %v3154_v48  ;;  %v2646_v24 = vld [vmem:[%s3459_s1 + $0x1a0] sm:$0xff]   ;;  %v2658_v36 = vld [vmem:[%s3459_s1 + $0x218] sm:$0xff]   ;;  %p2673_p3 = pnand %p2672_p2, %p2666_p13 }
  0x37   : > { %2397 = vmatprep.subr.bf16.mxu1 %v2727_v1  ;;  %v1315_v53 = vrot.slane %v1313_v35, 6  ;;  %v1322_v55 = vshll.u32 %v1311_v28, 16  ;;  %v2659_v48 = vld [vmem:[%s3459_s1 + $0x220] sm:$0xff]   ;;  %v2661_v35 = vld [vmem:[%s3459_s1 + $0x230] sm:$0xff]  }
  0x38   : > { %v962_v59 = vcombine.low %v3009_v45, %v3037_v56  ;;  %v2642_v45 = vld [vmem:[%s3459_s1 + $0x190] sm:$0xff]   ;;  %v2647_v56 = vld [vmem:[%s3459_s1 + $0x1e0] sm:$0xff]  }
  0x39   : > { %2376 = vmatpush3.bf16.msra.mxu0 %v2606_v57  ;;  %v1057_v57 = vrot.slane %v2991_v3, 7 }
  0x3a   : > { %2398 = vmatpush3.bf16.msra.mxu1 %v2609_v54  ;;  %2377 = vmatprep.subr.bf16.mxu0 %v2727_v1  ;;  %v1318_v54 = vrot.slane %v1316_v49, 7  ;;  %v2662_v49 = vld [vmem:[%s3459_s1 + $0x238] sm:$0xff]  }
  0x3b   : > { %2399 = vmatprep.subr.bf16.mxu1 %v2727_v1  ;;  %v1058_v3 = vsel %vm3085_vm14, %v2110_v44, %v1057_v57  ;;  %v2655_v44 = vld [vmem:[%s3459_s1 + $0x200] sm:$0xff]  }
  0x3c   : > { %v1077_v38 = vcombine.low %v3113_v13, %v1058_v3  ;;  %v2636_v13 = vld [vmem:[%s3459_s1 + $0x138] sm:$0xff]  }
  0x3d   : > { %2378 = vmatpush3.bf16.msra.mxu0 %v2608_v60  ;;  %v2629_v60 = vld [vmem:[%s3459_s1 + $0x158] sm:$0xff]  }
  0x3e   : > { %2400 = vmatpush3.bf16.msra.mxu1 %v2611_v58  ;;  %2379 = vmatprep.subr.bf16.mxu0 %v2727_v1  ;;  %v2183_v58 = vrot.slane %v1310_v42, 9  ;;  %v1091_v20 = vrot.slane %v1077_v38, %v2906_v26  ;;  %v2650_v42 = vld [vmem:[%s3459_s1 + $0x1b0] sm:$0xff]  }
  0x3f   : > { %2401 = vmatprep.subr.bf16.mxu1 %v2727_v1 }
  0x41   : > { %2380 = vmatpush3.bf16.msra.mxu0 %v2610_v63  ;;  %v1324_v63 = vrot.slane %v1322_v55, 7 }
  0x42   : > { %2402 = vmatpush3.bf16.msra.mxu1 %v2613_v61  ;;  %2381 = vmatprep.subr.bf16.mxu0 %v2727_v1  ;;  %v1319_v61 = vor.u32 %v1318_v54, %v1315_v53 }
  0x43   : > { %2403 = vmatprep.subr.bf16.mxu1 %v2727_v1 }
  0x44   : > { %v1320_v2 = vrot.slane %v1319_v61, 2 }
  0x45   : > { %2382 = vmatpush3.bf16.msra.mxu0 %v2612_v5  ;;  %v2626_v5 = vld [vmem:[%s3459_s1 + $0x110] sm:$0xff]  }
  0x46   : > { %2404 = vmatpush3.bf16.msra.mxu1 %v2615_v0  ;;  %2383 = vmatprep.subr.bf16.mxu0 %v2727_v1  ;;  %v1446_v0 = vrot.slane %v1311_v28, 7  ;;  %v1325_v7 = vsel %vm2983_vm7, %v1320_v2, %v1324_v63  ;;  %v2660_v28 = vld [vmem:[%s3459_s1 + $0x228] sm:$0xff]  }
  0x47   : > { %2405 = vmatprep.subr.bf16.mxu1 %v2727_v1  ;;  %v1343_v9 = vcombine.low %v3028_v52, %v1325_v7 }
  0x48   : > { %v1447_v4 = vsel %vm3085_vm14, %v2183_v58, %v1446_v0 }
  0x49   : > { %2384 = vmatpush3.bf16.msra.mxu0 %v2614_v18  ;;  %v1465_v8 = vcombine.low %v1058_v3, %v1447_v4  ;;  %v1350_v29 = vrot.slane %v1343_v9, %v2906_v26  ;;  %v2630_v18 = vld [vmem:[%s3459_s1 + $0x120] sm:$0xff]  }
  0x4a   : > { %2406 = vmatpush3.bf16.msra.mxu1 %v2617_v6  ;;  %2385 = vmatprep.subr.bf16.mxu0 %v2727_v1  ;;  %v2631_v6 = vld [vmem:[%s3459_s1 + $0x160] sm:$0xff]  }
  0x4b   : > { %2407 = vmatprep.subr.bf16.mxu1 %v2727_v1  ;;  %v3187_v11 = vrot.slane %v1465_v8, %v2906_v26  ;;  %v3201_v52 = vcombine.low %v3024_v51, %v1350_v29  ;;  %v1084_v51 = vrot.slane %v1076_v30, %v2906_v26  ;;  %v2634_v26 = vld [vmem:[%s3459_s1 + $0x130] sm:$0xff]  }
  0x4d   : > { %2386 = vmatpush3.bf16.msra.mxu0 %v2616_v14  ;;  %v1473_v12 = vcombine.low %v3133_v25, %v3187_v11  ;;  %v1092_v39 = vcombine.low %v1084_v51, %v1091_v20  ;;  %v2641_v14 = vld [vmem:[%s3459_s1 + $0x1c8] sm:$0xff]  }
  0x4e   : > { %2408 = vmatpush3.bf16.msra.mxu1 %v2619_v32  ;;  %2387 = vmatprep.subr.bf16.mxu0 %v2727_v1  ;;  %v2637_v32 = vld [vmem:[%s3459_s1 + $0x178] sm:$0xff]  }
  0x4f   : > { %2433 = vmatprep.subr.bf16.mxu1 %v2727_v1 }
  0x51   : > { %2410 = vmatmul.mubr.bf16.vlgmr.msra.gmra.mrb[4].mxu1 %v814_v21  ;;  %2388 = vmatpush3.bf16.msra.mxu0 %v2618_v23  ;;  %v2640_v21 = vld [vmem:[%s3459_s1 + $0x188] sm:$0xff]  }
  0x52   : > { %2434 = vmatpush3.bf16.msra.mxu1 %v2623_v22  ;;  %2449 = vmatprep.mubr.msk.bf16.mxu1 %vm2728_vm0, %v2727_v1  ;;  %v2645_v22 = vld [vmem:[%s3459_s1 + $0x1d8] sm:$0xff]   ;;  %v2649_v23 = vld [vmem:[%s3459_s1 + $0x1e8] sm:$0xff]  }
  0x53   : > { %2435 = vmatprep.subr.bf16.mxu1 %v2727_v1  ;;  %2413 = vmatprep.subr.bf16.mxu0 %v2727_v1 }
  0x54   : > { %2390 = vmatmul.mubr.bf16.vlgmr.msra.gmra.mrb[4].mxu0 %v687_v43  ;;  %v2652_v43 = vld [vmem:[%s3459_s1 + $0x1b8] sm:$0xff]  }
  0x55   : > { %2414 = vmatpush3.bf16.msra.mxu0 %v2620_v46  ;;  %2429 = vmatprep.mubr.msk.bf16.mxu0 %vm2728_vm0, %v2727_v1  ;;  %v2656_v46 = vld [vmem:[%s3459_s1 + $0x208] sm:$0xff]  }
  0x56   : > { %2436 = vmatpush3.bf16.msra.mxu1 %v2625_v27  ;;  %2415 = vmatprep.subr.bf16.mxu0 %v2727_v1  ;;  %v2651_v27 = vld [vmem:[%s3459_s1 + $0x1f0] sm:$0xff]  }
  0x57   : > { %2437 = vmatprep.subr.bf16.mxu1 %v2727_v1 }
  0x59   : > { %2416 = vmatpush3.bf16.msra.mxu0 %v2624_v34 }
  0x5a   : > { %2438 = vmatpush3.bf16.msra.mxu1 %v2627_v47  ;;  %2417 = vmatprep.subr.bf16.mxu0 %v2727_v1  ;;  %v2657_v47 = vld [vmem:[%s3459_s1 + $0x210] sm:$0xff]  }
  0x5b   : > { %2439 = vmatprep.subr.bf16.mxu1 %v2727_v1 }
  0x5d   : > { %2418 = vmatpush3.bf16.msra.mxu0 %v2626_v5 }
  0x5e   : > { %2440 = vmatpush3.bf16.msra.mxu1 %v2629_v60  ;;  %2419 = vmatprep.subr.bf16.mxu0 %v2727_v1 }
  0x5f   : > { %2441 = vmatprep.subr.bf16.mxu1 %v2727_v1 }
  0x61   : > { %2420 = vmatpush3.bf16.msra.mxu0 %v2628_v37 }
  0x62   : > { %2442 = vmatpush3.bf16.msra.mxu1 %v2631_v6  ;;  %2421 = vmatprep.subr.bf16.mxu0 %v2727_v1 }
  0x63   : > { %2443 = vmatprep.subr.bf16.mxu1 %v2727_v1 }
  0x65   : > { %2422 = vmatpush3.bf16.msra.mxu0 %v2630_v18 }
  0x66   : > { %2444 = vmatpush3.bf16.msra.mxu1 %v2633_v62  ;;  %2423 = vmatprep.subr.bf16.mxu0 %v2727_v1 }
  0x67   : > { %2445 = vmatprep.subr.bf16.mxu1 %v2727_v1 }
  0x69   : > { %2424 = vmatpush3.bf16.msra.mxu0 %v2632_v31 }
  0x6a   : > { %2446 = vmatpush3.bf16.msra.mxu1 %v2635_v19  ;;  %2425 = vmatprep.subr.bf16.mxu0 %v2727_v1 }
  0x6b   : > { %2447 = vmatprep.subr.bf16.mxu1 %v2727_v1 }
  0x6d   : > { %2426 = vmatpush3.bf16.msra.mxu0 %v2634_v26 }
  0x6e   : > { %2448 = vmatpush3.bf16.msra.mxu1 %v2637_v32  ;;  %2427 = vmatprep.subr.bf16.mxu0 %v2727_v1 }
  0x6f   : > { %2473 = vmatprep.subr.bf16.mxu1 %v2727_v1 }
  0x71   : > { %2450 = vmatmul.mubr.bf16.vlgmr.msra.gmra.mrb[8].mxu1 %v1092_v39  ;;  %2428 = vmatpush3.bf16.msra.mxu0 %v2636_v13 }
  0x72   : > { %2474 = vmatpush3.bf16.msra.mxu1 %v2639_v40  ;;  %2489 = vmatprep.mubr.msk.bf16.mxu1 %vm2728_vm0, %v2727_v1 }
  0x73   : > { %2475 = vmatprep.subr.bf16.mxu1 %v2727_v1  ;;  %2453 = vmatprep.subr.bf16.mxu0 %v2727_v1 }
  0x74   : > { %2430 = vmatmul.mubr.bf16.vlgmr.msra.gmra.mrb[8].mxu0 %v962_v59  ;;  %v2644_v59 = vld [vmem:[%s3459_s1 + $0x198] sm:$0xff]  }
  0x75   : > { %2454 = vmatpush3.bf16.msra.mxu0 %v2638_v15  ;;  %2469 = vmatprep.mubr.msk.bf16.mxu0 %vm2728_vm0, %v2727_v1 }
  0x76   : > { %2476 = vmatpush3.bf16.msra.mxu1 %v2641_v14  ;;  %2455 = vmatprep.subr.bf16.mxu0 %v2727_v1 }
  0x77   : > { %2477 = vmatprep.subr.bf16.mxu1 %v2727_v1 }
  0x79   : > { %2456 = vmatpush3.bf16.msra.mxu0 %v2640_v21 }
  0x7a   : > { %2478 = vmatpush3.bf16.msra.mxu1 %v2643_v16  ;;  %2457 = vmatprep.subr.bf16.mxu0 %v2727_v1 }
  0x7b   : > { %2479 = vmatprep.subr.bf16.mxu1 %v2727_v1 }
  0x7d   : > { %2458 = vmatpush3.bf16.msra.mxu0 %v2642_v45 }
  0x7e   : > { %2480 = vmatpush3.bf16.msra.mxu1 %v2645_v22  ;;  %2459 = vmatprep.subr.bf16.mxu0 %v2727_v1 }
  0x7f   : > { %2481 = vmatprep.subr.bf16.mxu1 %v2727_v1 }
  0x81   : > { %2460 = vmatpush3.bf16.msra.mxu0 %v2644_v59 }
  0x82   : > { %2482 = vmatpush3.bf16.msra.mxu1 %v2647_v56  ;;  %2461 = vmatprep.subr.bf16.mxu0 %v2727_v1 }
  0x83   : > { %2483 = vmatprep.subr.bf16.mxu1 %v2727_v1 }
  0x85   : > { %2462 = vmatpush3.bf16.msra.mxu0 %v2646_v24 }
  0x86   : > { %2484 = vmatpush3.bf16.msra.mxu1 %v2649_v23  ;;  %2463 = vmatprep.subr.bf16.mxu0 %v2727_v1  ;;  %v2208_v23 = vld [vmem:[%s3460_s2] ss:$0 sm:$0xff] }
  0x87   : > { %2485 = vmatprep.subr.bf16.mxu1 %v2727_v1 }
  0x89   : > { %2464 = vmatpush3.bf16.msra.mxu0 %v2648_v33 }
  0x8a   : > { %2486 = vmatpush3.bf16.msra.mxu1 %v2651_v27  ;;  %2465 = vmatprep.subr.bf16.mxu0 %v2727_v1 }
  0x8b   : > { %2487 = vmatprep.subr.bf16.mxu1 %v2727_v1 }
  0x8d   : > { %2466 = vmatpush3.bf16.msra.mxu0 %v2650_v42 }
  0x8e   : > { %2488 = vmatpush3.bf16.msra.mxu1 %v2653_v41  ;;  %2467 = vmatprep.subr.bf16.mxu0 %v2727_v1 }
  0x91   : > { %2490 = vmatmul.mubr.bf16.vlgmr.msra.gmra.mrb[12].mxu1 %v3201_v52  ;;  %2468 = vmatpush3.bf16.msra.mxu0 %v2652_v43 }
  0x92   : > { %2493 = vmatprep.subr.bf16.mxu0 %v2727_v1 }
  0x94   : > { %2470 = vmatmul.mubr.bf16.vlgmr.msra.gmra.mrb[12].mxu0 %v1211_v50 }
  0x95   : > { %2494 = vmatpush3.bf16.msra.mxu0 %v2655_v44  ;;  %2509 = vmatprep.mubr.msk.bf16.mxu0 %vm2728_vm0, %v2727_v1  ;;  %v2209_v44 = vld [vmem:[%s3461_s3] ss:$0 sm:$0xff]  ;;  %vm1643_vm0 = vcmask 31744  }
  0x96   : > { %2495 = vmatprep.subr.bf16.mxu0 %v2727_v1 }
  0x99   : > { %2496 = vmatpush3.bf16.msra.mxu0 %v2656_v46 }
  0x9a   : > { %2497 = vmatprep.subr.bf16.mxu0 %v2727_v1 }
  0x9d   : > { %2498 = vmatpush3.bf16.msra.mxu0 %v2657_v47 }
  0x9e   : > { %2499 = vmatprep.subr.bf16.mxu0 %v2727_v1 }
  0xa1   : > { %2500 = vmatpush3.bf16.msra.mxu0 %v2658_v36 }
  0xa2   : > { %2501 = vmatprep.subr.bf16.mxu0 %v2727_v1 }
  0xa5   : > { %2502 = vmatpush3.bf16.msra.mxu0 %v2659_v48 }
  0xa6   : > { %2503 = vmatprep.subr.bf16.mxu0 %v2727_v1 }
  0xa9   : > { %2504 = vmatpush3.bf16.msra.mxu0 %v2660_v28 }
  0xaa   : > { %2505 = vmatprep.subr.bf16.mxu0 %v2727_v1 }
  0xad   : > { %2506 = vmatpush3.bf16.msra.mxu0 %v2661_v35 }
  0xae   : > { %2507 = vmatprep.subr.bf16.mxu0 %v2727_v1 }
  0xb1   : > { %2508 = vmatpush3.bf16.msra.mxu0 %v2662_v49 }
  0xb4   : > { %2510 = vmatmul.mubr.bf16.vlgmr.msra.gmra.mrb[16].mxu0 %v1473_v12 }
 0x104   : > { %v624_v34 = vpop.f32.mrb[0].mxu1 }
 0x105   : > { %v2371_v50 = vpop.f32.mrb[1].mxu1 }
 0x106   : > { %v627_v53 = vpop.f32.mrb[2].mxu1 }
 0x107   : > { %v2372_v54 = vpop.f32.mrb[3].mxu1  ;;  %v517_v55 = vpop.f32.mrb[0].mxu0 }
 0x108   : > { %v625_v57 = vadd.f32 %v624_v34, %v517_v55  ;;  %v2351_v58 = vpop.f32.mrb[1].mxu0 }
 0x109   : > { %v520_v60 = vpop.f32.mrb[2].mxu0  ;;  %v1607_v58 = vld [vmem:[%s3462_s4] sm:$0xff] }
 0x10a   : > { %v628_v61 = vadd.f32 %v627_v53, %v520_v60  ;;  %v2352_v63 = vpop.f32.mrb[3].mxu0  ;;  %2515 = vmatprep.mubr.msk.f32.mxu1 %vm1643_vm0, %v1607_v58  ;;  %v1620_v60 = vand.u32 127, %v308_v10  ;;  %v1608_v10 = vld [vmem:[%s3462_s4 + $0x8] sm:$0xff] }
 0x10c   : > { %v1623_v63 = vsub.s32 %v1620_v60, %v2883_v17  ;;  %v1776_v17 = vld [vmem:[%s3463_s5] sm:$0xf] }
 0x124   : > { %v898_v0 = vpop.f32.mrb[4].mxu1 }
 0x125   : > { %v2411_v2 = vpop.f32.mrb[5].mxu1 }
 0x126   : > { %v901_v3 = vpop.f32.mrb[6].mxu1 }
 0x127   : > { %v2412_v4 = vpop.f32.mrb[7].mxu1  ;;  %v771_v1 = vpop.f32.mrb[4].mxu0 }
 0x128   : > { %v778_v5 = vadd.f32 %v771_v1, %v625_v57  ;;  %v2391_v6 = vpop.f32.mrb[5].mxu0 }
 0x129   : > { %v774_v7 = vpop.f32.mrb[6].mxu0 }
 0x12a   : > { %v779_v25 = vadd.f32 %v774_v7, %v628_v61  ;;  %v905_v8 = vadd.f32 %v898_v0, %v778_v5  ;;  %v2392_v9 = vpop.f32.mrb[7].mxu0 }
 0x12b   : > { %v1609_v9 = vld [vmem:[%s3462_s4 + $0x10] sm:$0xff] }
 0x12c   : > { %v906_v11 = vadd.f32 %v901_v3, %v779_v25 }
 0x144   : > { %v1176_v29 = vpop.f32.mrb[8].mxu1 }
 0x145   : > { %v2451_v37 = vpop.f32.mrb[9].mxu1 }
 0x146   : > { %v1179_v62 = vpop.f32.mrb[10].mxu1  ;;  %v1612_v37 = vld [vmem:[%s3462_s4 + $0x28] sm:$0xff] }
 0x147   : > { %v2452_v12 = vpop.f32.mrb[11].mxu1  ;;  %v1046_v52 = vpop.f32.mrb[8].mxu0 }
 0x148   : > { %v1053_v30 = vadd.f32 %v1046_v52, %v905_v8  ;;  %v2431_v38 = vpop.f32.mrb[9].mxu0  ;;  %v1614_v12 = vld [vmem:[%s3462_s4 + $0x38] sm:$0xff] }
 0x149   : > { %v1049_v18 = vpop.f32.mrb[10].mxu0 }
 0x14a   : > { %v1054_v19 = vadd.f32 %v1049_v18, %v906_v11  ;;  %v1183_v51 = vadd.f32 %v1176_v29, %v1053_v30  ;;  %v2432_v20 = vpop.f32.mrb[11].mxu0  ;;  %v1610_v11 = vld [vmem:[%s3462_s4 + $0x18] sm:$0xff]  ;;  %v1611_v29 = vld [vmem:[%s3462_s4 + $0x20] sm:$0xff] }
 0x14c   : > { %v1184_v31 = vadd.f32 %v1179_v62, %v1054_v19  ;;  %v1613_v62 = vld [vmem:[%s3462_s4 + $0x30] sm:$0xff] }
 0x164   : > { %v1435_v32 = vpop.f32.mrb[12].mxu1 }
 0x165   : > { %v2491_v39 = vpop.f32.mrb[13].mxu1 }
 0x166   : > { %v1438_v26 = vpop.f32.mrb[14].mxu1 }
 0x167   : > { %v2492_v40 = vpop.f32.mrb[15].mxu1  ;;  %v1295_v13 = vpop.f32.mrb[12].mxu0 }
 0x168   : > { %v1302_v14 = vadd.f32 %v1295_v13, %v1183_v51  ;;  %v2471_v15 = vpop.f32.mrb[13].mxu0 }
 0x169   : > { %v1298_v16 = vpop.f32.mrb[14].mxu0 }
 0x16a   : > { %v1303_v21 = vadd.f32 %v1298_v16, %v1184_v31  ;;  %v1442_v22 = vadd.f32 %v1435_v32, %v1302_v14  ;;  %v2472_v45 = vpop.f32.mrb[15].mxu0  ;;  %v1778_v32 = vstv %s1777_s22 }
 0x16c   : > { %v1443_v56 = vadd.f32 %v1438_v26, %v1303_v21 }
 0x187   : > { %v1557_v59 = vpop.f32.mrb[16].mxu0 }
 0x188   : > { %v1564_v24 = vadd.f32 %v1557_v59, %v1442_v22  ;;  %v2511_v27 = vpop.f32.mrb[17].mxu0 }
 0x189   : > { %v1560_v33 = vpop.f32.mrb[18].mxu0 }
 0x18a   : > { %v1573_v41 = vadd.f32 %v2208_v23, %v1564_v24  ;;  %v1565_v42 = vadd.f32 %v1560_v33, %v1443_v56  ;;  %v2512_v43 = vpop.f32.mrb[19].mxu0 }
 0x18c   : > { %v1575_v46 = vmax.f32 %v1573_v41, 0.0  ;;  %v1574_v47 = vadd.f32 %v2208_v23, %v1565_v42 }
 0x18e   : > { %v1576_v36 = vmax.f32 %v1574_v47, 0.0  ;;  %v1590_v48 = vmul.f32 %v2209_v44, %v1575_v46  ;;  %v1579_v28 = vcombine.high %v1575_v46, %v1575_v46 }
 0x190   : > { %v1595_v35 = vsel %vm1594_vm15, %v1590_v48, 0.0  ;;  %v1592_v49 = vmul.f32 %v2209_v44, %v1576_v36  ;;  %v1591_v34 = vmul.f32 %v2209_v44, %v1579_v28  ;;  %v1580_v50 = vcombine.high %v1576_v36, %v1576_v36 }
 0x191   : > { %1596 = vadd.xlane.f32.xlu0 %v1595_v35 }
 0x192   : > { %v1601_v53 = vsel %vm1594_vm15, %v1592_v49, 0.0  ;;  %v1593_v54 = vmul.f32 %v2209_v44, %v1580_v50  ;;  %v1598_v55 = vsel %vm1594_vm15, %v1591_v34, 0.0 }
 0x193   : > { %1602 = vadd.xlane.f32.xlu1 %v1601_v53 }
 0x194   : > { %v1604_v57 = vsel %vm1594_vm15, %v1593_v54, 0.0 }
 0x195   : > { %1599 = vadd.xlane.f32.xlu0 %v1598_v55 }
 0x197   : > { %1605 = vadd.xlane.f32.xlu1 %v1604_v57 }
 0x21e   : > { %v1597_v61 = vpop.xlane.xlu0 %1596 }
 0x21f   : > { %v1624_v3 = vrot.slane %v1597_v61, %v1623_v63 }
 0x220   : > { %v1603_v0 = vpop.xlane.xlu1 %1602 }
 0x221   : > { %v1632_v1 = vrot.slane %v1603_v0, %v1623_v63 }
 0x222   : > { %v1600_v2 = vpop.xlane.xlu0 %1599 }
 0x223   : > { %v1628_v4 = vrot.slane %v1600_v2, %v1623_v63 }
 0x224   : > { %v1606_v5 = vpop.xlane.xlu1 %1605 }
 0x225   : > { %v1638_v6 = vsel %vm1637_vm1, %v1628_v4, %v1624_v3  ;;  %v1636_v7 = vrot.slane %v1606_v5, %v1623_v63 }
 0x226   : > { %v1640_v25 = vsel %vm632_vm9, %v1632_v1, %v1638_v6 }
 0x227   : > { %v1642_v8 = vsel %vm1641_vm2, %v1636_v7, %v1640_v25 }
 0x228   : > { %2513 = vmatprep.subr.msk.mxu1 %vm1668_vm3, %v1642_v8 }
 0x229   : > { %2514 = vmatpush3.msk.msra.mxu1 %vm1668_vm3, %v1642_v8 }
 0x22a   : > { %2516 = vmatmul.mubr.msk.f32.vlgmr.msra.gmra.mrb[16].mxu1 %vm1643_vm0, %v1608_v10  ;;  %2527 = vmatprep.subr.msk.mxu1 %vm1668_vm3, %v1776_v17 }
 0x22b   : > { %2518 = vmatprep.mubr.msk.f32.mxu1 %vm1643_vm0, %v1609_v9  ;;  %2528 = vmatpush3.msk.msra.mxu1 %vm1668_vm3, %v1776_v17 }
 0x22e   : > { %2519 = vmatmul.mubr.msk.f32.gmra.mrb[18].mxu1 %vm1643_vm0, %v1610_v11 }
 0x22f   : > { %2521 = vmatprep.mubr.msk.f32.mxu1 %vm1643_vm0, %v1611_v29 }
 0x232   : > { %2522 = vmatmul.mubr.msk.f32.gmra.mrb[20].mxu1 %vm1643_vm0, %v1612_v37 }
 0x233   : > { %2524 = vmatprep.mubr.msk.f32.mxu1 %vm1643_vm0, %v1613_v62 }
 0x236   : > { %2525 = vmatmul.mubr.msk.f32.gmra.mrb[22].mxu1 %vm1643_vm0, %v1614_v12 }
 0x2fd   : > { %v2517_v52 = vpop.f32.mrb[16].mxu1 }
 0x2fe   : > { %v1737_v30 = vpop.f32.mrb[17].mxu1 }
 0x2ff   : > { %2529 = vmatprep.mubr.msk.f32.mxu1 %vm1643_vm0, %v1737_v30 }
 0x300   : > { %2530 = vmatmul.mubr.msk.f32.vlgmr.msra.gmra.mrb[24].mxu1 %vm1643_vm0, %v2517_v52 }
 0x301   : > { %v2520_v38 = vpop.f32.mrb[18].mxu1 }
 0x302   : > { %v1747_v18 = vpop.f32.mrb[19].mxu1 }
 0x303   : > { %2532 = vmatprep.mubr.msk.f32.mxu1 %vm1643_vm0, %v1747_v18 }
 0x304   : > { %2533 = vmatmul.mubr.msk.f32.gmra.mrb[26].mxu1 %vm1643_vm0, %v2520_v38 }
 0x305   : > { %v2523_v19 = vpop.f32.mrb[20].mxu1 }
 0x306   : > { %v1757_v51 = vpop.f32.mrb[21].mxu1 }
 0x307   : > { %2535 = vmatprep.mubr.msk.f32.mxu1 %vm1643_vm0, %v1757_v51 }
 0x308   : > { %2536 = vmatmul.mubr.msk.f32.gmra.mrb[28].mxu1 %vm1643_vm0, %v2523_v19 }
 0x309   : > { %v2526_v20 = vpop.f32.mrb[22].mxu1 }
 0x30a   : > { %v1767_v31 = vpop.f32.mrb[23].mxu1 }
 0x30b   : > { %2538 = vmatprep.mubr.msk.f32.mxu1 %vm1643_vm0, %v1767_v31 }
 0x30c   : > { %2539 = vmatmul.mubr.msk.f32.gmra.mrb[30].mxu1 %vm1643_vm0, %v2526_v20 }
 0x3d3   : > { %v2531_v39 = vpop.f32.mrb[24].mxu1 }
 0x3d4   : > { %v1878_v26 = vadd.f32 %v2531_v39, %v1778_v32  ;;  %v1872_v40 = vpop.f32.mrb[25].mxu1 }
 0x3d5   : > { %v1873_v13 = vadd.f32 %v1872_v40, %v1778_v32 }
 0x3d6   : > { %1913 = vst.msk [vmem:[%s272_s30 + $0x8] sm:$0xff] %vm1911_vm4, %v1878_v26 }
 0x3d7   : > { %1912 = vst.msk [vmem:[%s272_s30] sm:$0xff] %vm1911_vm4, %v1873_v13  ;;  %v2534_v14 = vpop.f32.mrb[26].mxu1 }
 0x3d8   : > { %v1888_v15 = vadd.f32 %v2534_v14, %v1778_v32  ;;  %v1882_v16 = vpop.f32.mrb[27].mxu1 }
 0x3d9   : > { %v1883_v21 = vadd.f32 %v1882_v16, %v1778_v32 }
 0x3da   : > { %1915 = vst.msk [vmem:[%s272_s30 + $0x18] sm:$0xff] %vm1911_vm4, %v1888_v15 }
 0x3db   : > { %1914 = vst.msk [vmem:[%s272_s30 + $0x10] sm:$0xff] %vm1911_vm4, %v1883_v21  ;;  %v2537_v22 = vpop.f32.mrb[28].mxu1 }
 0x3dc   : > { %v1898_v45 = vadd.f32 %v2537_v22, %v1778_v32  ;;  %v1892_v56 = vpop.f32.mrb[29].mxu1 }
 0x3dd   : > { %v1893_v59 = vadd.f32 %v1892_v56, %v1778_v32 }
 0x3de   : > { %1917 = vst.msk [vmem:[%s272_s30 + $0x28] sm:$0xff] %vm1911_vm4, %v1898_v45 }
 0x3df   : > { %1916 = vst.msk [vmem:[%s272_s30 + $0x20] sm:$0xff] %vm1911_vm4, %v1893_v59  ;;  %v2540_v23 = vpop.f32.mrb[30].mxu1 }
 0x3e0   : > { %v1908_v24 = vadd.f32 %v2540_v23, %v1778_v32  ;;  %v1902_v27 = vpop.f32.mrb[31].mxu1 }
 0x3e1   : > { %v1903_v33 = vadd.f32 %v1902_v27, %v1778_v32 }
 0x3e2   : > { %1919 = vst.msk [vmem:[%s272_s30 + $0x38] sm:$0xff] %vm1911_vm4, %v1908_v24 }
 0x3e3   : > { %1918 = vst.msk [vmem:[%s272_s30 + $0x30] sm:$0xff] %vm1911_vm4, %v1903_v33 }
 0x3e4   : > { %2676 = shalt.err (!%p2673_p3)
}
 0x3e5   : > { %s2677_s20 = scalar_lea.hbm %s3409_s16, 1024  ;;  %s2681_s24 = scalar_lea.hbm %s3465_s7, 2048 }
 0x3e6   : > { %p2678_p4 = scmp.ne.s32.totalorder %s3409_s16, %s2677_s20  ;;  %p2682_p9 = scmp.lt.u32.totalorder %s3409_s16, %s3465_s7 }
 0x3e7   : > { %p2683_p10 = scmp.lt.u32.totalorder %s2681_s24, %s2677_s20  ;;  %p2685_p12 = scmp.lt.u32.totalorder %s2677_s20, %s3409_s16 }
 0x3e8   : > { %p2679_p7 = pnand %p2678_p4, %p2814_p5 }
 0x3e9   : > { %p2684_p11 = por %p2683_p10, %p2682_p9 }
 0x3ea   : > { %p2680_p8 = pneg %p2679_p7 }
 0x3eb   : > { %p2686_p13 = por %p2685_p12, %p2684_p11 }
 0x3ed   : > { %p2687_p0 = pnand %p2686_p13, %p2680_p8 }
 0x3ef   : > { %2690 = shalt.err (!%p2687_p0)
}
 0x3f0   : > { %s2731_s9 = smov 128   ;;  %s2732_s14 = smov 8  }
 0x3f1   : > { %2542 = dma.vmem_to_hbm [thread:$0]  (%p2814_p5), %s3411_s10, 1024, %s3409_s16, %s3417_s6, %s2731_s9, %s2731_s9, %s2732_s14  }
 0x3f2 PF: > { %p2548_p1 = scmp.ge.s32.totalorder %s2725_s29, 2  ;;  %s1949_s15 = sand.u32 1, %s2713_s26  }
 0x3f3   : > { %s1950_s17 = scalar_lea.sflag [#allocation4], %s1949_s15 }
 0x3f4   : > { %p2545_p2 = pnand %p2548_p1, %p2818_p6 }
 0x3f6   : > { %2708 = dma.done.wait (!%p2545_p2), %s1950_s17, 1024  }
 0x3f7   : > { %2710 = vsyncadd (!%p2545_p2), %s1950_s17, 4294966272  ;;  %p18_p3 = scmp.ge.s32.totalorder %s2801_s8, 4   ;;  %s3474_s26 = smov %s2717_s27 }
 0x3f8   : > { %s3475_s27 = smov %s2721_s28  ;;  %s3476_s28 = smov %s2812_s11 }
 0x3f9   : > { %s3477_s29 = smov %s2801_s8  ;;  %20 = sbr.rel (!%p18_p3) target bundleno = 5 (0x5), region = 91 }
 0x400   :  { %1955 = vsyncpa [#allocation4], 1 }
 0x401   :  { %1957 = vsyncpa [#allocation4 + $0x1], 1 }

</bundles_post_ra>
